<compile_context>
chip_gen: v7x
topology: tpu7x:2x2x1
jax: 0.10.0
libtpu: 0.0.40
codegen_flags: <defaults>
</compile_context>

<pallas_src>
import functools
import math

import jax
import jax.numpy as jnp
from jax.experimental import pallas as pl
from jax.experimental.pallas import tpu as pltpu

BN_EPS = 1e-5


def conv_layer_kernel(atom_ref, bond_ref, gidx_ref,
                      ws_ref, wnb_ref, bfull_ref, wf_ref, bfinal_ref, bn_ref,
                      out_ref, lhs_scr, sum_scr, *, Bb, N, M, h_a, h_b, H):
    """One grid step processes `Bb` batch elements (all N atoms, M neighbours each)."""
    E = h_a
    HE = H * E
    P4 = 4 * HE
    NN = Bb * N                 # atoms resident in this block
    R = NN * M                  # (atom, neighbour) rows in this block

    atom = atom_ref[...].reshape(NN, E)                     # f32 (kept for the residual)
    atom_bf = atom.astype(jnp.bfloat16)
    bond = bond_ref[...].reshape(R, h_b)                    # bf16 (cast host-side)
    gidx = gidx_ref[...].reshape(R, 1)                      # int32; -1 == masked query node

    # --- fc_full, split host-side as W_self / [W_nbr ; W_bond] -------------------------
    # Self projection: one bf16 MXU pass (K = E); the fc_full bias is folded in here once
    # so the broadcast add below carries it for free.
    g_self = (jnp.dot(atom_bf, ws_ref[...], preferred_element_type=jnp.float32)
              + bfull_ref[...])                             # (NN, 4HE) f32

    # Gather-then-project: exact one-hot selection matmul over the resident atom block
    # (0/1 and bf16 atom values are exact in bf16; f32 accumulate).  Masked query nodes
    # are encoded host-side as gidx == -1 -> all-zero row, which reproduces the
    # reference's `atom_nbr_emb *= atom_mask` (the mask is per *query* node).
    cols = jax.lax.broadcasted_iota(jnp.int32, (R, NN), 1)
    onehot = (cols == gidx).astype(jnp.bfloat16)            # (R, NN)
    gathered = jnp.dot(onehot, atom_bf, preferred_element_type=jnp.float32)    # (R, E)

    # Fused neighbour + bond projection: pack [gathered | bond] into a bf16 VMEM scratch
    # slab (masked stores), then ONE matmul with K = E + h_b against [W_nbr ; W_bond].
    lhs_scr[:, 0:E] = gathered.astype(jnp.bfloat16)
    lhs_scr[:, E:E + h_b] = bond
    g_nb = jnp.dot(lhs_scr[...], wnb_ref[...], preferred_element_type=jnp.float32)  # (R,4HE)

    # Elementwise chain in f32 (v5e-safe; switch to bf16 on v6e/v7x if tolerance allows).
    gated = g_nb.reshape(NN, M, P4) + g_self[:, None, :]    # (NN, M, 4HE) f32

    # --- multi-head attention: per-head, statically unrolled ---------------------------
    # Equivalent to an (n, h)-batched dot_general; no tile+head_mask block-diagonal trick,
    # hence no H-fold zero FLOPs and no (NN, H*M, H*E) temporaries.  1/sqrt(H) was folded
    # into the att1 columns of fc_full host-side.  bf16 operands, f32 accumulation.
    # NOTE: the reference's (1 - mask) * -10000 attention term is constant along the
    # softmax (key) axis -> mathematical no-op and is dropped; if neighbours are ever
    # masked *per key*, this shortcut (and the gidx == -1 trick) must be revisited.
    for h in range(H):
        c_h = gated[:, :, HE + h * E:HE + (h + 1) * E].astype(jnp.bfloat16)       # core_h
        a1_h = gated[:, :, 2 * HE + h * E:2 * HE + (h + 1) * E].astype(jnp.bfloat16)
        a2_h = gated[:, :, 3 * HE + h * E:3 * HE + (h + 1) * E].astype(jnp.bfloat16)

        s = jnp.einsum('nme,nke->nmk', a1_h, a2_h,
                       preferred_element_type=jnp.float32)                        # (NN,M,M)
        s = s - jnp.max(s, axis=-1, keepdims=True)          # per-head safe softmax
        e = jnp.exp(s)
        # approx reciprocal (EUP slot): probs sum to 1 +/- ~1e-3 — inside check tolerance.
        p = e * pl.reciprocal(jnp.sum(e, axis=-1, keepdims=True), approx=True)
        # TODO(synk): Dropout(p=0.2) on p is identity in eval mode.
        ctx = jnp.einsum('nmk,nke->nme', p.astype(jnp.bfloat16), c_h,
                         preferred_element_type=jnp.float32)                       # (NN,M,E)

        gate_h = gated[:, :, h * E:(h + 1) * E]
        # sigmoid(gate) * relu(ctx), written into this head's lane slice of a bf16 scratch
        # slab so fc_final below stays a single matmul over K = H*E.
        sum_scr[:, h * E:(h + 1) * E] = (
            jax.nn.sigmoid(gate_h) * jnp.maximum(ctx, 0.0)).reshape(R, E).astype(jnp.bfloat16)

    # --- fc_final (single matmul, K = H*E), folded BN affines, neighbour sum, residual --
    nbr = (jnp.dot(sum_scr[...], wf_ref[...], preferred_element_type=jnp.float32)
           + bfinal_ref[...])                               # (R, E)
    nbr = jnp.maximum(nbr * bn_ref[0:1, :] + bn_ref[1:2, :], 0.0)    # bn_hidden1 + ReLU
    summed = jnp.sum(nbr.reshape(NN, M, E), axis=1)         # sum over the M neighbours
    summed = summed * bn_ref[2:3, :] + bn_ref[3:4, :]       # bn_output
    # TODO(synk): a lane-dense (Bb, N*E) output slab would avoid masked vst on the E<128
    # tail but needs a lane-splitting relayout of the (NN, E) result; deferred.
    out_ref[...] = jnp.maximum(atom + summed, 0.0).reshape(Bb, N, E)


def conv_layer_forward(atom_emb, nbr_emb, nbr_adj_list, atom_mask, params, head_num,
                       block_b=None, vmem_limit_bytes=48 * 1024 * 1024):
    B, N, h_a = atom_emb.shape
    M = nbr_adj_list.shape[2]
    h_b = nbr_emb.shape[-1]
    E = h_a
    HE = head_num * h_a
    P4 = 4 * HE

    if block_b is None:
        # >= 2 grid steps: DMA/compute pipelining and both v7x TensorCores.  For production
        # sizes pick block_b so block_b*N is a multiple of 128 (v5e) / 256 (v6e/v7x).
        block_b = max(1, B // 2)
    assert B % block_b == 0, (B, block_b)

    # ---- host-side parameter packing (one-time, free) ---------------------------------
    inv_sqrt_h = 1.0 / math.sqrt(head_num)
    col_scale = jnp.concatenate([jnp.ones((2 * HE,), jnp.float32),
                                 jnp.full((HE,), inv_sqrt_h, jnp.float32),
                                 jnp.ones((HE,), jnp.float32)])
    w_full = params['w_full'] * col_scale                      # fold 1/sqrt(H) into att1
    b_full = (params['b_full'] * col_scale).astype(jnp.float32)  # (1, 4HE)
    w_self = w_full[:E].astype(jnp.bfloat16)                   # (E, 4HE)
    w_nb = w_full[E:].astype(jnp.bfloat16)                     # [W_nbr ; W_bond] (E+h_b,4HE)
    w_final = params['w_final'].astype(jnp.bfloat16)           # (HE, E)
    b_final = params['b_final'].astype(jnp.float32)            # (1, E)

    def bn_affine(bn):
        gamma, beta, mean, var = bn
        scale = gamma * jax.lax.rsqrt(var + BN_EPS)
        return scale, beta - mean * scale

    s1, t1 = bn_affine(params['bn1'])
    s2, t2 = bn_affine(params['bn2'])
    bn = jnp.stack([s1, t1, s2, t2]).astype(jnp.float32)       # (4, E)

    # ---- host-side input packing: collapse (N, M), block-local masked gather index -----
    bond = nbr_emb.reshape(B, N * M, h_b).astype(jnp.bfloat16)
    local_off = (jnp.arange(B, dtype=jnp.int32) % block_b) * N
    gidx = nbr_adj_list.astype(jnp.int32) + local_off[:, None, None]
    # Fold the query-node mask into the index: -1 -> all-zero one-hot row in the kernel.
    gidx = jnp.where(atom_mask[:, :, :1] > 0, gidx, -1).reshape(B, N * M, 1)

    kernel = functools.partial(conv_layer_kernel, Bb=block_b, N=N, M=M,
                               h_a=h_a, h_b=h_b, H=head_num)
    R = block_b * N * M

    return pl.pallas_call(
        kernel,
        out_shape=jax.ShapeDtypeStruct((B, N, h_a), jnp.float32),
        grid_spec=pltpu.PrefetchScalarGridSpec(
            num_scalar_prefetch=0,
            grid=(B // block_b,),
            in_specs=[
                pl.BlockSpec((block_b, N, h_a), lambda b: (b, 0, 0)),      # atom_emb (f32)
                pl.BlockSpec((block_b, N * M, h_b), lambda b: (b, 0, 0)),  # bond embs (bf16)
                pl.BlockSpec((block_b, N * M, 1), lambda b: (b, 0, 0)),    # masked local idx
                # Grid-invariant weights below; could be single-buffered (pl.Buffered(1))
                # to free VMEM under v7x's 64 MiB budget — they are tiny here.
                pl.BlockSpec((h_a, P4), lambda b: (0, 0)),                 # W_self
                pl.BlockSpec((h_a + h_b, P4), lambda b: (0, 0)),           # [W_nbr ; W_bond]
                pl.BlockSpec((1, P4), lambda b: (0, 0)),                   # fc_full bias
                pl.BlockSpec((HE, h_a), lambda b: (0, 0)),                 # fc_final weight
                pl.BlockSpec((1, h_a), lambda b: (0, 0)),                  # fc_final bias
                pl.BlockSpec((4, h_a), lambda b: (0, 0)),                  # folded BN affines
            ],
            out_specs=pl.BlockSpec((block_b, N, h_a), lambda b: (b, 0, 0)),
            scratch_shapes=[
                pltpu.VMEM((R, h_a + h_b), jnp.bfloat16),   # packed [gathered | bond] lhs
                pltpu.VMEM((R, HE), jnp.bfloat16),          # packed per-head gated context
            ],
        ),
        compiler_params=pltpu.CompilerParams(
            dimension_semantics=("parallel",),
            # Safe on all generations (v7x: 64 MiB/TC physical).  Raise toward 64–100 MiB
            # on v5e/v6e and grow block_b so block_b*N fills the MXU rows.
            vmem_limit_bytes=vmem_limit_bytes,
        ),
    )(atom_emb.astype(jnp.float32), bond, gidx,
      w_self, w_nb, b_full, w_final, b_final, bn)


def conv_layer_ref(atom_emb, nbr_emb, nbr_adj_list, atom_mask, params, head_num,
                   mm_dtype=None):
    """Pure-JAX reference mirroring the PyTorch forward (eval mode).

    mm_dtype: optional dtype every matmul/attention operand is cast to (f32 accumulation),
    so the kernel's bf16 MXU inputs can be checked tightly.
    """
    B, N, h_a = atom_emb.shape
    M = nbr_adj_list.shape[2]
    HE = head_num * h_a

    def cast(x):
        return x if mm_dtype is None else x.astype(mm_dtype)

    def mm(a, b):
        return jnp.matmul(cast(a), cast(b), preferred_element_type=jnp.float32)

    def ein(eq, a, b):
        return jnp.einsum(eq, cast(a), cast(b), preferred_element_type=jnp.float32)

    idx = nbr_adj_list.reshape(B, N * M)
    atom_nbr = jnp.take_along_axis(atom_emb, idx[:, :, None], axis=1).reshape(B, N, M, h_a)
    atom_nbr = atom_nbr * atom_mask[:, :, :, None]
    attn_mask = jnp.broadcast_to(atom_mask, (B, N, M))

    total = jnp.concatenate([jnp.broadcast_to(atom_emb[:, :, None, :], (B, N, M, h_a)),
                             atom_nbr, nbr_emb], axis=-1)
    gated = mm(total, params['w_full']) + params['b_full'][0]
    gate, core, att1, att2 = jnp.split(gated, 4, axis=3)
    core = core.reshape(B, N, M, head_num, h_a)
    att1 = att1.reshape(B, N, M, head_num, h_a)
    att2 = att2.reshape(B, N, M, head_num, h_a)

    amask = ((1.0 - attn_mask) * -10000.0)[:, :, None, None, :]
    a1 = jnp.transpose(att1, (0, 1, 3, 2, 4))
    a2 = jnp.transpose(att2, (0, 1, 3, 2, 4))
    c = jnp.transpose(core, (0, 1, 3, 2, 4))
    scores = ein('bnhme,bnhke->bnhmk', a1, a2) / math.sqrt(head_num) + amask
    probs = jax.nn.softmax(scores, axis=-1)
    ctx = ein('bnhmk,bnhke->bnhme', probs, c)
    core2 = jax.nn.relu(jnp.transpose(ctx, (0, 1, 3, 2, 4)))

    gate = jax.nn.sigmoid(gate.reshape(B, N, M, head_num, h_a))
    sumed = (gate * core2).reshape(B, N, M, HE)
    sumed = mm(sumed, params['w_final']) + params['b_final'][0]

    g1, be1, m1, v1 = params['bn1']
    sumed = (sumed - m1) / jnp.sqrt(v1 + BN_EPS) * g1 + be1
    sumed = jax.nn.relu(sumed)
    sumed = jnp.sum(sumed, axis=2)
    g2, be2, m2, v2 = params['bn2']
    sumed = (sumed - m2) / jnp.sqrt(v2 + BN_EPS) * g2 + be2
    return jax.nn.relu(atom_emb + sumed)


if __name__ == "__main__":
    B, N, M = 2, 8, 4
    h_a, h_b, head_num = 32, 16, 2

    key = jax.random.PRNGKey(0)
    k = jax.random.split(key, 12)
    atom_emb = jax.random.normal(k[0], (B, N, h_a), jnp.float32)
    nbr_emb = jax.random.normal(k[1], (B, N, M, h_b), jnp.float32)
    nbr_adj_list = jax.random.randint(k[2], (B, N, M), 0, N, jnp.int32)
    atom_mask = (jax.random.uniform(k[3], (B, N, 1)) > 0.2).astype(jnp.float32)

    d_in = 2 * h_a + h_b
    bound_full = 1.0 / math.sqrt(d_in)
    bound_final = 1.0 / math.sqrt(head_num * h_a)

    def bn_params(k1, k2, k3, k4):
        return jnp.stack([
            jax.random.uniform(k1, (h_a,), jnp.float32, 0.8, 1.2),   # gamma
            0.1 * jax.random.normal(k2, (h_a,), jnp.float32),        # beta
            0.1 * jax.random.normal(k3, (h_a,), jnp.float32),        # running mean
            jax.random.uniform(k4, (h_a,), jnp.float32, 0.5, 1.5),   # running var
        ])

    params = {
        'w_full': jax.random.uniform(k[4], (d_in, 4 * head_num * h_a), jnp.float32,
                                     -bound_full, bound_full),
        'b_full': jax.random.uniform(k[5], (1, 4 * head_num * h_a), jnp.float32,
                                     -bound_full, bound_full),
        'w_final': jax.random.uniform(k[6], (head_num * h_a, h_a), jnp.float32,
                                      -bound_final, bound_final),
        'b_final': jax.random.uniform(k[7], (1, h_a), jnp.float32,
                                      -bound_final, bound_final),
        'bn1': bn_params(k[8], k[9], k[10], k[11]),
        'bn2': bn_params(k[11], k[10], k[9], k[8]),
    }

    out = conv_layer_forward(atom_emb, nbr_emb, nbr_adj_list, atom_mask, params, head_num)
    out = jax.block_until_ready(out)
    assert out.shape == (B, N, h_a)

    # Tight check vs a reference whose matmul/attention operands use the same bf16 casts
    # (small residual slack for the approx-reciprocal softmax and host-side scale folding).
    ref_bf16 = conv_layer_ref(atom_emb, nbr_emb, nbr_adj_list, atom_mask, params, head_num,
                              mm_dtype=jnp.bfloat16)
    err_bf16 = float(jnp.max(jnp.abs(out - ref_bf16)))
    assert jnp.allclose(out, ref_bf16, rtol=2e-2, atol=2e-2), err_bf16

    # Looser fidelity check vs the full-f32 reference (kernel uses bf16 MXU operands).
    ref_f32 = conv_layer_ref(atom_emb, nbr_emb, nbr_adj_list, atom_mask, params, head_num)
    err_f32 = float(jnp.max(jnp.abs(out - ref_f32)))
    assert jnp.allclose(out, ref_f32, rtol=1e-1, atol=1e-1), err_f32

    print("KERNEL_OK")
</pallas_src>

<mosaic_0001>
module attributes {stable_mosaic.version = 11 : i64} {
  func.func @conv_layer_kernel(%arg0: i32, %arg1: memref<1x8x32xf32, #tpu.memory_space<vmem>>, %arg2: memref<1x32x16xbf16, #tpu.memory_space<vmem>>, %arg3: memref<1x32x1xi32, #tpu.memory_space<vmem>>, %arg4: memref<32x256xbf16, #tpu.memory_space<vmem>>, %arg5: memref<48x256xbf16, #tpu.memory_space<vmem>>, %arg6: memref<1x256xf32, #tpu.memory_space<vmem>>, %arg7: memref<64x32xbf16, #tpu.memory_space<vmem>>, %arg8: memref<1x32xf32, #tpu.memory_space<vmem>>, %arg9: memref<4x32xf32, #tpu.memory_space<vmem>>, %arg10: memref<1x8x32xf32, #tpu.memory_space<vmem>>, %arg11: memref<32x48xbf16, #tpu.memory_space<vmem>>, %arg12: memref<32x64xbf16, #tpu.memory_space<vmem>>) attributes {dimension_semantics = [#tpu.dimension_semantics<parallel>], iteration_bounds = array<i64: 2>, scalar_prefetch = 0 : i64, scratch_operands = 2 : i64, tpu.core_type = #tpu.core_type<tc>, window_params = [{transform_indices = @transform_0, window_bounds = array<i64: 1, 8, 32>}, {transform_indices = @transform_1, window_bounds = array<i64: 1, 32, 16>}, {transform_indices = @transform_2, window_bounds = array<i64: 1, 32, 1>}, {pipeline_mode = #tpu.pipeline_mode<synchronous>, transform_indices = @transform_3, window_bounds = array<i64: 32, 256>}, {pipeline_mode = #tpu.pipeline_mode<synchronous>, transform_indices = @transform_4, window_bounds = array<i64: 48, 256>}, {pipeline_mode = #tpu.pipeline_mode<synchronous>, transform_indices = @transform_5, window_bounds = array<i64: 1, 256>}, {pipeline_mode = #tpu.pipeline_mode<synchronous>, transform_indices = @transform_6, window_bounds = array<i64: 64, 32>}, {pipeline_mode = #tpu.pipeline_mode<synchronous>, transform_indices = @transform_7, window_bounds = array<i64: 1, 32>}, {pipeline_mode = #tpu.pipeline_mode<synchronous>, transform_indices = @transform_8, window_bounds = array<i64: 4, 32>}, {transform_indices = @transform_9, window_bounds = array<i64: 1, 8, 32>}]} {
    %c0 = arith.constant 0 : index
    %c0_0 = arith.constant 0 : index
    %c0_1 = arith.constant 0 : index
    %0 = vector.load %arg1[%c0, %c0_0, %c0_1] : memref<1x8x32xf32, #tpu.memory_space<vmem>>, vector<1x8x32xf32>
    %1 = vector.shape_cast %0 : vector<1x8x32xf32> to vector<8x32xf32>
    %2 = arith.truncf %1 : vector<8x32xf32> to vector<8x32xbf16>
    %c0_2 = arith.constant 0 : index
    %c0_3 = arith.constant 0 : index
    %c0_4 = arith.constant 0 : index
    %3 = vector.load %arg2[%c0_2, %c0_3, %c0_4] : memref<1x32x16xbf16, #tpu.memory_space<vmem>>, vector<1x32x16xbf16>
    %4 = vector.shape_cast %3 : vector<1x32x16xbf16> to vector<32x16xbf16>
    %c0_5 = arith.constant 0 : index
    %c0_6 = arith.constant 0 : index
    %c0_7 = arith.constant 0 : index
    %5 = vector.load %arg3[%c0_5, %c0_6, %c0_7] : memref<1x32x1xi32, #tpu.memory_space<vmem>>, vector<1x32x1xi32>
    %6 = vector.shape_cast %5 : vector<1x32x1xi32> to vector<32x1xi32>
    %c0_8 = arith.constant 0 : index
    %c0_9 = arith.constant 0 : index
    %7 = vector.load %arg4[%c0_8, %c0_9] : memref<32x256xbf16, #tpu.memory_space<vmem>>, vector<32x256xbf16>
    %cst = arith.constant dense<0.000000e+00> : vector<8x256xf32>
    %8 = tpu.matmul %2, %7, %cst {dimension_numbers = #tpu.dot_dimension_numbers<[1], [0], [0], [1], [0, 0, 1, 1], [], []>} : vector<8x32xbf16>, vector<32x256xbf16>, vector<8x256xf32> -> vector<8x256xf32>
    %c0_10 = arith.constant 0 : index
    %c0_11 = arith.constant 0 : index
    %9 = vector.load %arg6[%c0_10, %c0_11] : memref<1x256xf32, #tpu.memory_space<vmem>>, vector<1x256xf32>
    %10 = vector.broadcast %9 : vector<1x256xf32> to vector<8x256xf32>
    %11 = arith.addf %8, %10 : vector<8x256xf32>
    %12 = tpu.iota {dimensions = array<i32: 1>} : vector<32x8xi32>
    %13 = vector.broadcast %6 : vector<32x1xi32> to vector<32x8xi32>
    %14 = arith.cmpi eq, %12, %13 : vector<32x8xi32>
    %15 = arith.extui %14 : vector<32x8xi1> to vector<32x8xi32>
    %16 = arith.sitofp %15 : vector<32x8xi32> to vector<32x8xf32>
    %17 = arith.truncf %16 : vector<32x8xf32> to vector<32x8xbf16>
    %cst_12 = arith.constant dense<0.000000e+00> : vector<32x32xf32>
    %18 = tpu.matmul %17, %2, %cst_12 {dimension_numbers = #tpu.dot_dimension_numbers<[1], [0], [0], [1], [0, 0, 1, 1], [], []>} : vector<32x8xbf16>, vector<8x32xbf16>, vector<32x32xf32> -> vector<32x32xf32>
    %19 = arith.truncf %18 : vector<32x32xf32> to vector<32x32xbf16>
    %c0_13 = arith.constant 0 : index
    %c0_14 = arith.constant 0 : index
    %20 = vector.load %arg11[%c0_13, %c0_14] : memref<32x48xbf16, #tpu.memory_space<vmem>>, vector<32x32xbf16>
    tpu.vector_store %arg11[%c0_13, %c0_14], %19 {strides = array<i32>} : memref<32x48xbf16, #tpu.memory_space<vmem>>, vector<32x32xbf16>,
    %c0_15 = arith.constant 0 : index
    %c32 = arith.constant 32 : index
    %21 = vector.load %arg11[%c0_15, %c32] : memref<32x48xbf16, #tpu.memory_space<vmem>>, vector<32x16xbf16>
    tpu.vector_store %arg11[%c0_15, %c32], %4 {strides = array<i32>} : memref<32x48xbf16, #tpu.memory_space<vmem>>, vector<32x16xbf16>,
    %c0_16 = arith.constant 0 : index
    %c0_17 = arith.constant 0 : index
    %22 = vector.load %arg11[%c0_16, %c0_17] : memref<32x48xbf16, #tpu.memory_space<vmem>>, vector<32x48xbf16>
    %c0_18 = arith.constant 0 : index
    %c0_19 = arith.constant 0 : index
    %23 = vector.load %arg5[%c0_18, %c0_19] : memref<48x256xbf16, #tpu.memory_space<vmem>>, vector<48x256xbf16>
    %cst_20 = arith.constant dense<0.000000e+00> : vector<32x256xf32>
    %24 = tpu.matmul %22, %23, %cst_20 {dimension_numbers = #tpu.dot_dimension_numbers<[1], [0], [0], [1], [0, 0, 1, 1], [], []>} : vector<32x48xbf16>, vector<48x256xbf16>, vector<32x256xf32> -> vector<32x256xf32>
    %25 = vector.shape_cast %24 : vector<32x256xf32> to vector<8x4x256xf32>
    %26 = vector.shape_cast %11 : vector<8x256xf32> to vector<8x1x256xf32>
    %27 = vector.broadcast %26 : vector<8x1x256xf32> to vector<8x4x256xf32>
    %28 = arith.addf %25, %27 : vector<8x4x256xf32>
    %29 = vector.extract_strided_slice %28 {offsets = [0, 0, 64], sizes = [8, 4, 32], strides = [1, 1, 1]} : vector<8x4x256xf32> to vector<8x4x32xf32>
    %30 = arith.truncf %29 : vector<8x4x32xf32> to vector<8x4x32xbf16>
    %31 = vector.extract_strided_slice %28 {offsets = [0, 0, 128], sizes = [8, 4, 32], strides = [1, 1, 1]} : vector<8x4x256xf32> to vector<8x4x32xf32>
    %32 = arith.truncf %31 : vector<8x4x32xf32> to vector<8x4x32xbf16>
    %33 = vector.extract_strided_slice %28 {offsets = [0, 0, 192], sizes = [8, 4, 32], strides = [1, 1, 1]} : vector<8x4x256xf32> to vector<8x4x32xf32>
    %34 = arith.truncf %33 : vector<8x4x32xf32> to vector<8x4x32xbf16>
    "tpu.trace_start"() <{level = 10 : i32, message = "nme,nke->nmk"}> : () -> ()
    %cst_21 = arith.constant dense<0.000000e+00> : vector<8x4x4xf32>
    %35 = tpu.matmul %32, %34, %cst_21 {dimension_numbers = #tpu.dot_dimension_numbers<[2], [2], [1], [1], [0, 0, 0, 1, 1, 1], [0], [0]>} : vector<8x4x32xbf16>, vector<8x4x32xbf16>, vector<8x4x4xf32> -> vector<8x4x4xf32>
    "tpu.trace_stop"() : () -> ()
    %cst_22 = arith.constant dense<0xFF800000> : vector<8x4xf32>
    %36 = vector.multi_reduction <maximumf>, %35, %cst_22 [2] : vector<8x4x4xf32> to vector<8x4xf32>
    %37 = vector.shape_cast %36 : vector<8x4xf32> to vector<8x4x1xf32>
    %38 = vector.broadcast %37 : vector<8x4x1xf32> to vector<8x4x4xf32>
    %39 = arith.subf %35, %38 : vector<8x4x4xf32>
    %40 = math.exp %39 : vector<8x4x4xf32>
    %cst_23 = arith.constant dense<0.000000e+00> : vector<8x4xf32>
    %41 = vector.multi_reduction <add>, %40, %cst_23 [2] : vector<8x4x4xf32> to vector<8x4xf32>
    %42 = vector.shape_cast %41 : vector<8x4xf32> to vector<8x4x1xf32>
    %43 = tpu.reciprocal %42 {approx = true} : vector<8x4x1xf32> -> vector<8x4x1xf32>
    %44 = vector.broadcast %43 : vector<8x4x1xf32> to vector<8x4x4xf32>
    %45 = arith.mulf %40, %44 : vector<8x4x4xf32>
    %46 = arith.truncf %45 : vector<8x4x4xf32> to vector<8x4x4xbf16>
    "tpu.trace_start"() <{level = 10 : i32, message = "nmk,nke->nme"}> : () -> ()
    %cst_24 = arith.constant dense<0.000000e+00> : vector<8x4x32xf32>
    %47 = tpu.matmul %46, %30, %cst_24 {dimension_numbers = #tpu.dot_dimension_numbers<[2], [1], [1], [2], [0, 0, 0, 1, 1, 2], [0], [0]>} : vector<8x4x4xbf16>, vector<8x4x32xbf16>, vector<8x4x32xf32> -> vector<8x4x32xf32>
    "tpu.trace_stop"() : () -> ()
    %48 = vector.extract_strided_slice %28 {offsets = [0, 0, 0], sizes = [8, 4, 32], strides = [1, 1, 1]} : vector<8x4x256xf32> to vector<8x4x32xf32>
    %49 = arith.negf %48 : vector<8x4x32xf32>
    %50 = math.exp %49 : vector<8x4x32xf32>
    %cst_25 = arith.constant 1.000000e+00 : f32
    %51 = vector.broadcast %cst_25 : f32 to vector<8x4x32xf32>
    %52 = arith.addf %51, %50 : vector<8x4x32xf32>
    %53 = arith.divf %51, %52 : vector<8x4x32xf32>
    %cst_26 = arith.constant 0.000000e+00 : f32
    %54 = vector.broadcast %cst_26 : f32 to vector<8x4x32xf32>
    %55 = arith.maximumf %47, %54 : vector<8x4x32xf32>
    %56 = arith.mulf %53, %55 : vector<8x4x32xf32>
    %57 = vector.shape_cast %56 : vector<8x4x32xf32> to vector<32x32xf32>
    %58 = arith.truncf %57 : vector<32x32xf32> to vector<32x32xbf16>
    %c0_27 = arith.constant 0 : index
    %c0_28 = arith.constant 0 : index
    %59 = vector.load %arg12[%c0_27, %c0_28] : memref<32x64xbf16, #tpu.memory_space<vmem>>, vector<32x32xbf16>
    tpu.vector_store %arg12[%c0_27, %c0_28], %58 {strides = array<i32>} : memref<32x64xbf16, #tpu.memory_space<vmem>>, vector<32x32xbf16>,
    %60 = vector.extract_strided_slice %28 {offsets = [0, 0, 96], sizes = [8, 4, 32], strides = [1, 1, 1]} : vector<8x4x256xf32> to vector<8x4x32xf32>
    %61 = arith.truncf %60 : vector<8x4x32xf32> to vector<8x4x32xbf16>
    %62 = vector.extract_strided_slice %28 {offsets = [0, 0, 160], sizes = [8, 4, 32], strides = [1, 1, 1]} : vector<8x4x256xf32> to vector<8x4x32xf32>
    %63 = arith.truncf %62 : vector<8x4x32xf32> to vector<8x4x32xbf16>
    %64 = vector.extract_strided_slice %28 {offsets = [0, 0, 224], sizes = [8, 4, 32], strides = [1, 1, 1]} : vector<8x4x256xf32> to vector<8x4x32xf32>
    %65 = arith.truncf %64 : vector<8x4x32xf32> to vector<8x4x32xbf16>
    "tpu.trace_start"() <{level = 10 : i32, message = "nme,nke->nmk"}> : () -> ()
    %cst_29 = arith.constant dense<0.000000e+00> : vector<8x4x4xf32>
    %66 = tpu.matmul %63, %65, %cst_29 {dimension_numbers = #tpu.dot_dimension_numbers<[2], [2], [1], [1], [0, 0, 0, 1, 1, 1], [0], [0]>} : vector<8x4x32xbf16>, vector<8x4x32xbf16>, vector<8x4x4xf32> -> vector<8x4x4xf32>
    "tpu.trace_stop"() : () -> ()
    %cst_30 = arith.constant dense<0xFF800000> : vector<8x4xf32>
    %67 = vector.multi_reduction <maximumf>, %66, %cst_30 [2] : vector<8x4x4xf32> to vector<8x4xf32>
    %68 = vector.shape_cast %67 : vector<8x4xf32> to vector<8x4x1xf32>
    %69 = vector.broadcast %68 : vector<8x4x1xf32> to vector<8x4x4xf32>
    %70 = arith.subf %66, %69 : vector<8x4x4xf32>
    %71 = math.exp %70 : vector<8x4x4xf32>
    %cst_31 = arith.constant dense<0.000000e+00> : vector<8x4xf32>
    %72 = vector.multi_reduction <add>, %71, %cst_31 [2] : vector<8x4x4xf32> to vector<8x4xf32>
    %73 = vector.shape_cast %72 : vector<8x4xf32> to vector<8x4x1xf32>
    %74 = tpu.reciprocal %73 {approx = true} : vector<8x4x1xf32> -> vector<8x4x1xf32>
    %75 = vector.broadcast %74 : vector<8x4x1xf32> to vector<8x4x4xf32>
    %76 = arith.mulf %71, %75 : vector<8x4x4xf32>
    %77 = arith.truncf %76 : vector<8x4x4xf32> to vector<8x4x4xbf16>
    "tpu.trace_start"() <{level = 10 : i32, message = "nmk,nke->nme"}> : () -> ()
    %cst_32 = arith.constant dense<0.000000e+00> : vector<8x4x32xf32>
    %78 = tpu.matmul %77, %61, %cst_32 {dimension_numbers = #tpu.dot_dimension_numbers<[2], [1], [1], [2], [0, 0, 0, 1, 1, 2], [0], [0]>} : vector<8x4x4xbf16>, vector<8x4x32xbf16>, vector<8x4x32xf32> -> vector<8x4x32xf32>
    "tpu.trace_stop"() : () -> ()
    %79 = vector.extract_strided_slice %28 {offsets = [0, 0, 32], sizes = [8, 4, 32], strides = [1, 1, 1]} : vector<8x4x256xf32> to vector<8x4x32xf32>
    %80 = arith.negf %79 : vector<8x4x32xf32>
    %81 = math.exp %80 : vector<8x4x32xf32>
    %cst_33 = arith.constant 1.000000e+00 : f32
    %82 = vector.broadcast %cst_33 : f32 to vector<8x4x32xf32>
    %83 = arith.addf %82, %81 : vector<8x4x32xf32>
    %84 = arith.divf %82, %83 : vector<8x4x32xf32>
    %cst_34 = arith.constant 0.000000e+00 : f32
    %85 = vector.broadcast %cst_34 : f32 to vector<8x4x32xf32>
    %86 = arith.maximumf %78, %85 : vector<8x4x32xf32>
    %87 = arith.mulf %84, %86 : vector<8x4x32xf32>
    %88 = vector.shape_cast %87 : vector<8x4x32xf32> to vector<32x32xf32>
    %89 = arith.truncf %88 : vector<32x32xf32> to vector<32x32xbf16>
    %c0_35 = arith.constant 0 : index
    %c32_36 = arith.constant 32 : index
    %90 = vector.load %arg12[%c0_35, %c32_36] : memref<32x64xbf16, #tpu.memory_space<vmem>>, vector<32x32xbf16>
    tpu.vector_store %arg12[%c0_35, %c32_36], %89 {strides = array<i32>} : memref<32x64xbf16, #tpu.memory_space<vmem>>, vector<32x32xbf16>,
    %c0_37 = arith.constant 0 : index
    %c0_38 = arith.constant 0 : index
    %91 = vector.load %arg12[%c0_37, %c0_38] : memref<32x64xbf16, #tpu.memory_space<vmem>>, vector<32x64xbf16>
    %c0_39 = arith.constant 0 : index
    %c0_40 = arith.constant 0 : index
    %92 = vector.load %arg7[%c0_39, %c0_40] : memref<64x32xbf16, #tpu.memory_space<vmem>>, vector<64x32xbf16>
    %cst_41 = arith.constant dense<0.000000e+00> : vector<32x32xf32>
    %93 = tpu.matmul %91, %92, %cst_41 {dimension_numbers = #tpu.dot_dimension_numbers<[1], [0], [0], [1], [0, 0, 1, 1], [], []>} : vector<32x64xbf16>, vector<64x32xbf16>, vector<32x32xf32> -> vector<32x32xf32>
    %c0_42 = arith.constant 0 : index
    %c0_43 = arith.constant 0 : index
    %94 = vector.load %arg8[%c0_42, %c0_43] : memref<1x32xf32, #tpu.memory_space<vmem>>, vector<1x32xf32>
    %95 = vector.broadcast %94 : vector<1x32xf32> to vector<32x32xf32>
    %96 = arith.addf %93, %95 : vector<32x32xf32>
    %c0_44 = arith.constant 0 : index
    %c0_45 = arith.constant 0 : index
    %97 = vector.load %arg9[%c0_44, %c0_45] : memref<4x32xf32, #tpu.memory_space<vmem>>, vector<1x32xf32>
    %98 = vector.broadcast %97 : vector<1x32xf32> to vector<32x32xf32>
    %99 = arith.mulf %96, %98 : vector<32x32xf32>
    %c1 = arith.constant 1 : index
    %c0_46 = arith.constant 0 : index
    %100 = vector.load %arg9[%c1, %c0_46] : memref<4x32xf32, #tpu.memory_space<vmem>>, vector<1x32xf32>
    %101 = vector.broadcast %100 : vector<1x32xf32> to vector<32x32xf32>
    %102 = arith.addf %99, %101 : vector<32x32xf32>
    %cst_47 = arith.constant 0.000000e+00 : f32
    %103 = vector.broadcast %cst_47 : f32 to vector<32x32xf32>
    %104 = arith.maximumf %102, %103 : vector<32x32xf32>
    %105 = vector.shape_cast %104 : vector<32x32xf32> to vector<8x4x32xf32>
    %cst_48 = arith.constant dense<0.000000e+00> : vector<8x32xf32>
    %106 = vector.multi_reduction <add>, %105, %cst_48 [1] : vector<8x4x32xf32> to vector<8x32xf32>
    %c2 = arith.constant 2 : index
    %c0_49 = arith.constant 0 : index
    %107 = vector.load %arg9[%c2, %c0_49] : memref<4x32xf32, #tpu.memory_space<vmem>>, vector<1x32xf32>
    %108 = vector.broadcast %107 : vector<1x32xf32> to vector<8x32xf32>
    %109 = arith.mulf %106, %108 : vector<8x32xf32>
    %c3 = arith.constant 3 : index
    %c0_50 = arith.constant 0 : index
    %110 = vector.load %arg9[%c3, %c0_50] : memref<4x32xf32, #tpu.memory_space<vmem>>, vector<1x32xf32>
    %111 = vector.broadcast %110 : vector<1x32xf32> to vector<8x32xf32>
    %112 = arith.addf %109, %111 : vector<8x32xf32>
    %113 = arith.addf %1, %112 : vector<8x32xf32>
    %cst_51 = arith.constant 0.000000e+00 : f32
    %114 = vector.broadcast %cst_51 : f32 to vector<8x32xf32>
    %115 = arith.maximumf %113, %114 : vector<8x32xf32>
    %116 = vector.shape_cast %115 : vector<8x32xf32> to vector<1x8x32xf32>
    %c0_52 = arith.constant 0 : index
    %c0_53 = arith.constant 0 : index
    %c0_54 = arith.constant 0 : index
    %117 = vector.load %arg10[%c0_52, %c0_53, %c0_54] : memref<1x8x32xf32, #tpu.memory_space<vmem>>, vector<1x8x32xf32>
    tpu.vector_store %arg10[%c0_52, %c0_53, %c0_54], %116 {strides = array<i32>} : memref<1x8x32xf32, #tpu.memory_space<vmem>>, vector<1x8x32xf32>,
    return
  }
  func.func @transform_0(%arg0: i32) -> (i32, i32, i32) {
    %c0_i32 = arith.constant 0 : i32
    %c0_i32_0 = arith.constant 0 : i32
    %c0_i32_1 = arith.constant 0 : i32
    return %arg0, %c0_i32, %c0_i32_0 : i32, i32, i32
  }
  func.func @transform_1(%arg0: i32) -> (i32, i32, i32) {
    %c0_i32 = arith.constant 0 : i32
    %c0_i32_0 = arith.constant 0 : i32
    %c0_i32_1 = arith.constant 0 : i32
    return %arg0, %c0_i32, %c0_i32_0 : i32, i32, i32
  }
  func.func @transform_2(%arg0: i32) -> (i32, i32, i32) {
    %c0_i32 = arith.constant 0 : i32
    %c0_i32_0 = arith.constant 0 : i32
    %c0_i32_1 = arith.constant 0 : i32
    return %arg0, %c0_i32, %c0_i32_0 : i32, i32, i32
  }
  func.func @transform_3(%arg0: i32) -> (i32, i32) {
    %c0_i32 = arith.constant 0 : i32
    %c0_i32_0 = arith.constant 0 : i32
    %c0_i32_1 = arith.constant 0 : i32
    return %c0_i32, %c0_i32_0 : i32, i32
  }
  func.func @transform_4(%arg0: i32) -> (i32, i32) {
    %c0_i32 = arith.constant 0 : i32
    %c0_i32_0 = arith.constant 0 : i32
    %c0_i32_1 = arith.constant 0 : i32
    return %c0_i32, %c0_i32_0 : i32, i32
  }
  func.func @transform_5(%arg0: i32) -> (i32, i32) {
    %c0_i32 = arith.constant 0 : i32
    %c0_i32_0 = arith.constant 0 : i32
    %c0_i32_1 = arith.constant 0 : i32
    return %c0_i32, %c0_i32_0 : i32, i32
  }
  func.func @transform_6(%arg0: i32) -> (i32, i32) {
    %c0_i32 = arith.constant 0 : i32
    %c0_i32_0 = arith.constant 0 : i32
    %c0_i32_1 = arith.constant 0 : i32
    return %c0_i32, %c0_i32_0 : i32, i32
  }
  func.func @transform_7(%arg0: i32) -> (i32, i32) {
    %c0_i32 = arith.constant 0 : i32
    %c0_i32_0 = arith.constant 0 : i32
    %c0_i32_1 = arith.constant 0 : i32
    return %c0_i32, %c0_i32_0 : i32, i32
  }
  func.func @transform_8(%arg0: i32) -> (i32, i32) {
    %c0_i32 = arith.constant 0 : i32
    %c0_i32_0 = arith.constant 0 : i32
    %c0_i32_1 = arith.constant 0 : i32
    return %c0_i32, %c0_i32_0 : i32, i32
  }
  func.func @transform_9(%arg0: i32) -> (i32, i32, i32) {
    %c0_i32 = arith.constant 0 : i32
    %c0_i32_0 = arith.constant 0 : i32
    %c0_i32_1 = arith.constant 0 : i32
    return %arg0, %c0_i32, %c0_i32_0 : i32, i32, i32
  }
}

</mosaic_0001>

<bundles_post_ra>
// kernel: tpu_custom_call.1
= control target key start
LH: loop header
LB: loop body
LE: loop exit
PB: predicated region body
PF: predicated region fallthrough
CT: control target
= control target key end

     0   :  { %s4603_s0 = inlined_call_operand.vmem [shape: f32[2,8,32], index: 0, kind: input, shape index: {}]   ;;  %s4604_s1 = inlined_call_operand.vmem [shape: bf16[2,32,16], index: 1, kind: input, shape index: {}]   ;;  %s4605_s2 = inlined_call_operand.vmem [shape: s32[2,32,1], index: 2, kind: input, shape index: {}]   ;;  %s4606_s3 = inlined_call_operand.vmem [shape: bf16[32,256], index: 3, kind: input, shape index: {}]   ;;  %s4607_s4 = inlined_call_operand.vmem [shape: bf16[48,256], index: 4, kind: input, shape index: {}]   ;;  %s4608_s5 = inlined_call_operand.vmem [shape: f32[1,256], index: 5, kind: input, shape index: {}]   ;;  %s4609_s6 = inlined_call_operand.vmem [shape: bf16[64,32], index: 6, kind: input, shape index: {}]   ;;  %s4610_s7 = inlined_call_operand.vmem [shape: f32[1,32], index: 7, kind: input, shape index: {}]   ;;  %s4611_s8 = inlined_call_operand.vmem [shape: f32[4,32], index: 8, kind: input, shape index: {}]   ;;  %s4612_s9 = inlined_call_operand.hbm [shape: f32[2,8,32], index: 9, kind: output, shape index: {}]  }
   0x1   :  { %4613 = sst [smem:[#allocation7_spill]] %s4603_s0 }
   0x2   :  { %4614 = sst [smem:[#allocation8_spill]] %s4605_s2 }
   0x3   :  { %14 = vsyncpa [#allocation5], 0 }
   0x4   :  { %16 = vsyncpa [#allocation5 + $0x1], 0  ;;  %s3892_s30 = smov 0   ;;  %s3894_s10 = smov 0  }
   0x5   :  { %s3896_s11 = smov 0   ;;  %s3898_s12 = smov 0  }
   0x6 LB: > { %s3913_s13 = sadd.s32 4294967295, %s3832_s12   ;;  %s3172_s14 = sadd.s32 4294967294, %s3832_s12   ;;  %s3832_s12 = sphi %s3898_s12, %s4622_s12   ;;  %s3828_s11 = sphi %s3896_s11, %s4621_s11   ;;  %s3824_s10 = sphi %s3894_s10, %s4620_s10   ;;  %s3820_s30 = sphi %s3892_s30, %s4619_s30  }
   0x7   : > { %s3917_s15 = sadd.s32 1, %s3832_s12   ;;  %s233_s16 = sadd.s32 1, %s3828_s11 }
   0x8   : > { %s230_s17 = ssub.s32 %s3832_s12, %s3917_s15  ;;  %p243_p0 = scmp.ne.s32.totalorder %s3828_s11, %s3824_s10 }
   0x9   : > { %p231_p1 = scmp.eq.s32.totalorder %s230_s17, 0  ;;  %p244_p2 = scmp.eq.s32.totalorder %s3913_s13, 1 }
   0xa   : > { %p249_p3 = scmp.ne.s32.totalorder %s3824_s10, %s3820_s30  ;;  %p250_p4 = scmp.eq.s32.totalorder %s3172_s14, 1 }
   0xb   : > { %s3928_s18 = scalar_select %p231_p1, %s3828_s11, %s233_s16  }
   0xc   : > { %p3930_p5 = por %p244_p2, %p243_p0  ;;  %p3934_p6 = por %p250_p4, %p249_p3 }
   0xd   : > { %p3175_p7 = scmp.ge.s32.totalorder %s3832_s12, 1  ;;  %p309_p8 = scmp.lt.s32.totalorder %s3832_s12, 3 }
   0xf   : > { %p310_p9 = pnand %p3175_p7, %p309_p8 }
  0x10   : > { %p354_p10 = scmp.lt.s32.totalorder (!%p310_p9), %s3913_s13, 1  ;;  %v3834_v0 = vmov (!%p310_p9), 0   ;;  %s4617_s2 = sld [smem:[#allocation8_spill]] (!%p310_p9)  ;;  %vm495_vm0 = vcmask (!%p310_p9), 1043456   ;;  %v3654_v8 = vld [vmem:[%s4606_s3 + $0x4] ss:$8 sps:$4 sm:$0xff] (!%p310_p9)   ;;  %v385_v15 = vlaneseq (!%p310_p9) }
  0x11   : > { %313 = sbr.rel (%p310_p9) target bundleno = 2560 (0xa00), region = 56  ;;  %3591 = vset.pattern.permute.xlu1 (!%p310_p9), %v3834_v0  ;;  %3590 = vset.pattern.permute.xlu0 (!%p310_p9), %v3834_v0  ;;  %s4618_s0 = sld [smem:[#allocation7_spill]] (!%p310_p9)  ;;  %v3656_v9 = vld [vmem:[%s4606_s3] ss:$8 sps:$4 sm:$0xff] (!%p310_p9)   ;;  %v3657_v10 = vld [vmem:[%s4606_s3 + $0x14] ss:$8 sps:$4 sm:$0xff] (!%p310_p9)  }
  0x12   : > { %451 = vmatprep.mubr.bf16.mxu0 (!%p310_p9), %v3834_v0  ;;  %v3659_v11 = vld [vmem:[%s4606_s3 + $0x10] ss:$8 sps:$4 sm:$0xff] (!%p310_p9)   ;;  %419 = vmatprep.subr.bf16.mxu0 (!%p310_p9), %v3654_v8  ;;  %vm415_vm1 = vcmask (!%p310_p9), 261120   ;;  %v3836_v14 = vmov (!%p310_p9), 0.0   ;;  %v461_v16 = vand.u32 (!%p310_p9), 127, %v385_v15  ;;  %vm488_vm6 = vcmask (!%p310_p9), 64512  }
  0x13   : > { %420 = vmatpush1.bf16.msra.mxu0 (!%p310_p9), %v3656_v9  ;;  %v3662_v27 = vld [vmem:[%s4607_s4 + $0x4] ss:$8 sps:$4 sm:$0xff] (!%p310_p9)   ;;  %v3660_v28 = vld [vmem:[%s4607_s4] ss:$8 sps:$4 sm:$0xff] (!%p310_p9)   ;;  %v3665_v29 = vld [vmem:[%s4607_s4 + $0x14] ss:$8 sps:$4 sm:$0xff] (!%p310_p9)  }
  0x14   : > { %421 = vmatprep.subr.bf16.mxu0 (!%p310_p9), %v3657_v10  ;;  %v3663_v30 = vld [vmem:[%s4607_s4 + $0x10] ss:$8 sps:$4 sm:$0xff] (!%p310_p9)   ;;  %v3668_v31 = vld [vmem:[%s4607_s4 + $0x24] ss:$8 sps:$4 sm:$0xff] (!%p310_p9)   ;;  %v3666_v32 = vld [vmem:[%s4607_s4 + $0x20] ss:$8 sps:$4 sm:$0xff] (!%p310_p9)  }
  0x15   : > { %v386_v33 = vshrl.u32 (!%p310_p9), %v385_v15, 7  ;;  %v3837_v34 = vmov (!%p310_p9), 1966171168   ;;  %v383_v39 = vld [vmem:[%s4608_s5] sm:$0x3] (!%p310_p9)  ;;  %vm567_vm7 = vcmask (!%p310_p9), 392448  }
  0x16   : > { %v697_v35 = vunpack.c.l.s4 (!%p310_p9), %v3837_v34  ;;  %vm608_vm8 = vcmask (!%p310_p9), 392192   ;;  %vm3839_vm9 = vmmov (!%p310_p9), 0   ;;  %vm1376_vm10 = vcmask (!%p310_p9), 1041408   ;;  %s3840_s16 = smov (!%p310_p9), 96   ;;  %s3255_s28 = sshll.u32 (!%p310_p9), %s3913_s13, 7 }
  0x17   : > { %422 = vmatpush1.bf16.msra.mxu0 (!%p310_p9), %v3659_v11  ;;  %v3997_v36 = vsub.s32 (!%p310_p9), 0, %v386_v33  ;;  %v3999_v37 = vsub.s32 (!%p310_p9), 1, %v386_v33  ;;  %vm1272_vm11 = vcmask (!%p310_p9), 27648   ;;  %vm1372_vm12 = vcmask (!%p310_p9), 31744  }
  0x18   : > { %s355_s21 = scalar_select %p354_p10, %s3913_s13, 1  ;;  %3345 = vmatprep.subr.bf16.mxu0 %v3836_v14  ;;  %v698_v38 = vunpack.c.0.s8 %v697_v35  ;;  %vm2825_vm13 = vcmask 523520   ;;  %vm2869_vm14 = vcmask 523264   ;;  %vm2959_vm15 = vcmask 257024  }
  0x19   : > { %v388_v41 = vrot.slane %v383_v39, %v3997_v36  ;;  %v392_v42 = vrot.slane %v383_v39, %v3999_v37 }
  0x1a   : > { %s3259_s22 = sshll.u32 %s355_s21, 5  ;;  %s3177_s26 = sshll.u32 %s355_s21, 3  ;;  %v701_v45 = vsub.s32 %v698_v38, %v386_v33 }
  0x1b   : > { %s367_s25 = scalar_lea.vmem %s4617_s2, %s3259_s22  ;;  %s3951_s29 = scalar_lea.vmem %s4618_s0, %s3177_s26 }
  0x1c   : > { %v377_v1 = vld [vmem:[%s367_s25 + $0x10] sm:$0xff]  ;;  %v375_v2 = vld [vmem:[%s367_s25] sm:$0xff]  ;;  %v378_v3 = vld [vmem:[%s367_s25 + $0x18] sm:$0xff]  ;;  %s3258_s14 = sshll.u32 %s355_s21, 4  ;;  %s3835_s21 = smov 32  }
  0x1d   : > { %469 = vperm.xlu1 %3591, %v377_v1   ;;  %463 = vperm.xlu0 %3590, %v375_v2   ;;  %v376_v4 = vld [vmem:[%s367_s25 + $0x8] sm:$0xff]  ;;  %v369_v5 = vld [vmem:[%s3951_s29] sm:$0xff]  ;;  %s362_s26 = scalar_lea.vmem %s4604_s1, %s3258_s14  ;;  %s3838_s14 = smov 64  }
  0x1e   : > { %v370_v6 = vpack.c.bf16 %v369_v5, %v369_v5  ;;  %v3652_v12 = vld [vmem:[%s362_s26] sm:$0xff]   ;;  %v3653_v13 = vld [vmem:[%s362_s26 + $0x8] sm:$0xff]   ;;  %s351_s26 = sand.u32 1, %s3824_s10  }
  0x1f   : > { %s3176_s27 = sshll.u32 %s351_s26, 3  ;;  %s3076_s17 = scalar_lea.sflag [#allocation5], %s351_s26 }
  0x20   : > { %3543 = vmatprep.subr.msk.bf16.mxu1 %vm495_vm0, %v370_v6  ;;  %v496_v7 = vsel %vm495_vm0, %v370_v6, 0  ;;  %3186 = vmatmul.mubr.msk.bf16.vlgmr.msra.gmra.mrb[0].mxu0 %vm415_vm1, %v370_v6  ;;  %vm3051_vm0 = vcmask 1041409  }
  0x21   : > { %472 = vperm.xlu1 %3591, %v378_v3   ;;  %466 = vperm.xlu0 %3590, %v376_v4  }
  0x22   : > { %3334 = vmatpush3.bf16.msra.mxu1 %v496_v7  ;;  %3347 = vmatprep.mubr.msk.bf16.mxu0 %vm3839_vm9, %v3836_v14 }
  0x23   : > { %615 = vmatprep.subr.bf16.mxu1 %v3662_v27 }
  0x25   : > { %561 = vrot.lane.b32.xlu0 %v3652_v12, %s3835_s21  ;;  %563 = vrot.lane.b32.xlu1 %v3653_v13, %s3835_s21 }
  0x9c   : > { %v470_v17 = vpop.permute.xlu1 %469  ;;  %v464_v18 = vpop.permute.xlu0 %463 }
  0x9d   : > { %vm476_vm2 = vcmp.eq.s32.totalorder %v461_v16, %v470_v17  ;;  %vm474_vm3 = vcmp.eq.s32.totalorder %v461_v16, %v464_v18 }
  0x9e   : > { %v3189_v21 = vsel %vm476_vm2, 1.0, %v3836_v14  ;;  %v3187_v22 = vsel %vm474_vm3, 1.0, %v3836_v14  ;;  %vm3054_vm2 = vcmask 1042434   ;;  %vm3057_vm3 = vcmask 1043459  }
  0xa0   : > { %v473_v19 = vpop.permute.xlu1 %472  ;;  %v467_v20 = vpop.permute.xlu0 %466 }
  0xa1   : > { %vm477_vm4 = vcmp.eq.s32.totalorder %v461_v16, %v473_v19  ;;  %vm475_vm5 = vcmp.eq.s32.totalorder %v461_v16, %v467_v20 }
  0xa2   : > { %v3190_v23 = vsel %vm477_vm4, 1.0, %v3836_v14  ;;  %v3188_v24 = vsel %vm475_vm5, 1.0, %v3836_v14  ;;  %vm3060_vm4 = vcmask 1044484   ;;  %vm3063_vm5 = vcmask 1045509  }
  0xa3   : > { %v487_v25 = vpack.c.bf16 %v3190_v23, %v3189_v21  ;;  %v486_v26 = vpack.c.bf16 %v3188_v24, %v3187_v22 }
  0xa4   : > { %v564_v1 = vpop.permute.xlu1 %563  ;;  %v562_v3 = vpop.permute.xlu0 %561 }
  0xa5   : > { %3335 = vmatprep.mubr.msk.bf16.mxu1 %vm488_vm6, %v486_v26 }
  0xa6   : > { %3336 = vmatmul.mubr.msk.bf16.vlgmr.msra.gmra.mrb[0].mxu1 %vm488_vm6, %v487_v25  ;;  %vm3066_vm6 = vcmask 1046534  }
  0xa7   : > { %647 = vmatprep.mubr.bf16.mxu1 %v3834_v0  ;;  %616 = vmatpush1.bf16.msra.mxu1 %v3660_v28 }
  0xa8   : > { %617 = vmatprep.subr.bf16.mxu1 %v3665_v29 }
  0xab   : > { %618 = vmatpush1.bf16.msra.mxu1 %v3663_v30 }
  0xac   : > { %619 = vmatprep.subr.bf16.mxu1 %v3668_v31 }
  0xaf   : > { %620 = vmatpush1.bf16.msra.mxu1 %v3666_v32 }
  0xb0   : > { %3339 = vmatprep.subr.bf16.mxu1 %v3836_v14 }
  0xf3   : > { %v453_v40 = vpop.f32.mrb[0].mxu0 }
  0xf4   : > { %v455_v43 = vpop.f32.mrb[1].mxu0  ;;  %v454_v46 = vadd.f32 %v453_v40, %v388_v41 }
  0xf5   : > { %v457_v44 = vpop.f32.mrb[2].mxu0  ;;  %v456_v47 = vadd.f32 %v455_v43, %v392_v42 }
  0xf6   : > { %v458_v48 = vpop.f32.mrb[3].mxu0 }
  0xf7   : > { %v694_v49 = vcombine.low %v454_v46, %v456_v47  ;;  %v695_v50 = vcombine.high %v454_v46, %v456_v47 }
  0xf9   : > { %v702_v51 = vrot.slane %v694_v49, %v701_v45  ;;  %v709_v52 = vrot.slane %v695_v50, %v701_v45 }
  0xfb   : > { %v710_v53 = vcombine.high %v702_v51, %v702_v51  ;;  %v711_v54 = vcombine.high %v709_v52, %v709_v52  ;;  %v718_v55 = vrot.slane %v702_v51, %v701_v45  ;;  %v725_v56 = vrot.slane %v709_v52, %v701_v45 }
  0xfd   : > { %v732_v57 = vrot.slane %v710_v53, %v701_v45  ;;  %v739_v58 = vrot.slane %v711_v54, %v701_v45  ;;  %v747_v6 = vrot.slane %v718_v55, %v3997_v36  ;;  %v751_v7 = vrot.slane %v718_v55, %v3999_v37 }
  0xfe   : > { %v740_v8 = vcombine.high %v718_v55, %v718_v55  ;;  %v779_v12 = vrot.slane %v725_v56, %v3997_v36  ;;  %v741_v20 = vcombine.high %v725_v56, %v725_v56 }
  0xff   : > { %v755_v9 = vrot.slane %v732_v57, %v3997_v36  ;;  %v759_v10 = vrot.slane %v732_v57, %v3999_v37  ;;  %v808_v11 = vcombine.low %v747_v6, %v751_v7  ;;  %v742_v13 = vcombine.high %v732_v57, %v732_v57 }
 0x100   : > { %v763_v15 = vrot.slane %v740_v8, %v3997_v36  ;;  %v767_v16 = vrot.slane %v740_v8, %v3999_v37  ;;  %v787_v18 = vrot.slane %v739_v58, %v3997_v36  ;;  %v791_v19 = vrot.slane %v739_v58, %v3999_v37 }
 0x101   : > { %v809_v17 = vcombine.low %v755_v9, %v759_v10  ;;  %v771_v21 = vrot.slane %v742_v13, %v3997_v36  ;;  %v775_v22 = vrot.slane %v742_v13, %v3999_v37  ;;  %v743_v26 = vcombine.high %v739_v58, %v739_v58 }
 0x102   : > { %v810_v23 = vcombine.low %v763_v15, %v767_v16  ;;  %v813_v25 = vcombine.low %v787_v18, %v791_v19  ;;  %v795_v27 = vrot.slane %v741_v20, %v3997_v36  ;;  %v799_v28 = vrot.slane %v741_v20, %v3999_v37 }
 0x103   : > { %v811_v29 = vcombine.low %v771_v21, %v775_v22  ;;  %v803_v30 = vrot.slane %v743_v26, %v3997_v36  ;;  %v807_v31 = vrot.slane %v743_v26, %v3999_v37 }
 0x104   : > { %v814_v32 = vcombine.low %v795_v27, %v799_v28 }
 0x105   : > { %v815_v33 = vcombine.low %v803_v30, %v807_v31 }
 0x179   : > { %v3337_v59 = vpop.f32.mrb[0].mxu1 }
 0x17a   : > { %v532_v60 = vpop.f32.mrb[1].mxu1 }
 0x17b   : > { %v3338_v61 = vpop.f32.mrb[2].mxu1 }
 0x17c   : > { %v548_v62 = vpack.c.bf16 %v3338_v61, %v3337_v59  ;;  %v535_v63 = vpop.f32.mrb[3].mxu1 }
 0x17d   : > { %v547_v2 = vpack.c.bf16 %v535_v63, %v532_v60 }
 0x17e   : > { %550 = vst.msk [vmem:[#allocation2 + $0x8] sm:$0xff] %vm415_vm1, %v548_v62 }
 0x17f   : > { %549 = vst.msk [vmem:[#allocation2] sm:$0xff] %vm415_vm1, %v547_v2 }
 0x180   : > { %569 = vst.msk [vmem:[#allocation2 + $0x8] sm:$0xff] %vm567_vm7, %v564_v1  ;;  %568 = vst.msk [vmem:[#allocation2] sm:$0xff] %vm567_vm7, %v562_v3  ;;  %vm3069_vm7 = vcmask 1047559  }
 0x187   : > { %v570_v4 = vld [vmem:[#allocation2] sm:$0xff]  ;;  %v571_v5 = vld [vmem:[#allocation2 + $0x8] sm:$0xff] }
 0x188   : > { %3201 = vmatmul.mubr.msk.bf16.vlgmr.msra.gmra.mrb[4].mxu1 %vm608_vm8, %v570_v4 }
 0x189   : > { %657 = vmatprep.mubr.bf16.mxu1 %v3834_v0  ;;  %v783_v0 = vrot.slane %v725_v56, %v3999_v37 }
 0x18b   : > { %v812_v24 = vcombine.low %v779_v12, %v783_v0 }
 0x190   : > { %3202 = vmatmul.mubr.msk.bf16.gmra.mrb[8].mxu1 %vm608_vm8, %v571_v5 }
 0x191   : > { %3341 = vmatprep.mubr.msk.bf16.mxu1 %vm3839_vm9, %v3836_v14 }
 0x25b   : > { %v649_v34 = vpop.f32.mrb[4].mxu1 }
 0x25c   : > { %v651_v35 = vpop.f32.mrb[5].mxu1 }
 0x25d   : > { %v676_v38 = vcombine.low %v649_v34, %v651_v35  ;;  %v677_v39 = vcombine.high %v649_v34, %v651_v35  ;;  %v653_v40 = vpop.f32.mrb[6].mxu1 }
 0x25e   : > { %v655_v41 = vpop.f32.mrb[7].mxu1 }
 0x25f   : > { %v4025_v42 = vadd.f32 %v808_v11, %v676_v38  ;;  %v4027_v43 = vadd.f32 %v809_v17, %v677_v39  ;;  %v678_v44 = vcombine.low %v653_v40, %v655_v41  ;;  %v679_v45 = vcombine.high %v653_v40, %v655_v41 }
 0x261   : > { %v4031_v46 = vcombine.high %v4025_v42, %v4025_v42  ;;  %v4035_v36 = vcombine.high %v4027_v43, %v4027_v43  ;;  %v4037_v37 = vadd.f32 %v810_v23, %v678_v44  ;;  %v4039_v47 = vadd.f32 %v811_v29, %v679_v45 }
 0x262   : > { %v4101_v7 = vpack.c.bf16 %v4027_v43, %v4027_v43  ;;  %v4109_v8 = vpack.c.bf16 %v4025_v42, %v4025_v42 }
 0x263   : > { %v659_v48 = vpop.f32.mrb[8].mxu1  ;;  %v4043_v49 = vpack.i.bf16 %v4035_v36, %v4031_v46  ;;  %v4047_v50 = vcombine.high %v4037_v37, %v4037_v37  ;;  %v4051_v51 = vcombine.high %v4039_v47, %v4039_v47  ;;  %v4115_v9 = vpack.c.bf16 %v4037_v37, %v4037_v37 }
 0x264   : > { %v661_v52 = vpop.f32.mrb[9].mxu1  ;;  %v4121_v10 = vpack.c.bf16 %v4039_v47, %v4039_v47 }
 0x265   : > { %v680_v53 = vcombine.low %v659_v48, %v661_v52  ;;  %v681_v54 = vcombine.high %v659_v48, %v661_v52  ;;  %v663_v55 = vpop.f32.mrb[10].mxu1  ;;  %3593 = vrot.lane.b32.xlu0 %v4043_v49, %s3838_s14  ;;  %v4057_v57 = vpack.i.bf16 %v4051_v51, %v4047_v50  ;;  %v867_v34 = vpack.c.bf16 %v4051_v51, %v4051_v51 }
 0x266   : > { %v665_v56 = vpop.f32.mrb[11].mxu1 }
 0x267   : > { %v4059_v58 = vadd.f32 %v812_v24, %v680_v53  ;;  %v4061_v59 = vadd.f32 %v813_v25, %v681_v54  ;;  %v682_v60 = vcombine.low %v663_v55, %v665_v56  ;;  %v683_v61 = vcombine.high %v663_v55, %v665_v56  ;;  %3598 = vrot.lane.b32.xlu1 %v4057_v57, %s3838_s14 }
 0x268   : > { %v864_v24 = vpack.c.bf16 %v4031_v46, %v4031_v46  ;;  %v865_v25 = vpack.c.bf16 %v4035_v36, %v4035_v36 }
 0x269   : > { %v4071_v62 = vcombine.high %v4059_v58, %v4059_v58  ;;  %v4075_v63 = vcombine.high %v4061_v59, %v4061_v59  ;;  %v4077_v1 = vadd.f32 %v814_v32, %v682_v60  ;;  %v4079_v2 = vadd.f32 %v815_v33, %v683_v61 }
 0x26a   : > { %v866_v33 = vpack.c.bf16 %v4047_v50, %v4047_v50 }
 0x26b   : > { %v4083_v3 = vpack.i.bf16 %v4075_v63, %v4071_v62  ;;  %v4087_v4 = vcombine.high %v4077_v1, %v4077_v1  ;;  %v4091_v5 = vcombine.high %v4079_v2, %v4079_v2  ;;  %v868_v45 = vpack.c.bf16 %v4071_v62, %v4071_v62 }
 0x26c   : > { %v869_v46 = vpack.c.bf16 %v4075_v63, %v4075_v63 }
 0x26d   : > { %3603 = vrot.lane.b32.xlu0 %v4083_v3, %s3838_s14  ;;  %v4097_v6 = vpack.i.bf16 %v4091_v5, %v4087_v4  ;;  %v870_v52 = vpack.c.bf16 %v4087_v4, %v4087_v4  ;;  %v871_v53 = vpack.c.bf16 %v4091_v5, %v4091_v5 }
 0x26f   : > { %3608 = vrot.lane.b32.xlu1 %v4097_v6, %s3838_s14 }
 0x271   : > { %1421 = vrot.lane.b32.xlu0 %v4101_v7, %s3838_s14 }
 0x273   : > { %1370 = vrot.lane.b32.xlu1 %v4109_v8, %s3838_s14 }
 0x277   : > { %1470 = vrot.lane.b32.xlu1 %v4115_v9, %s3838_s14 }
 0x27b   : > { %1519 = vrot.lane.b32.xlu1 %v4121_v10, %s3838_s14 }
 0x2d7   : > { %v3594_v11 = vpop.permute.xlu0 %3593 }
 0x2d8   : > { %v3596_v12 = vunpack.i.h.bf16 %v3594_v11  ;;  %v3595_v13 = vunpack.i.l.bf16 %v3594_v11 }
 0x2d9   : > { %v3599_v0 = vpop.permute.xlu1 %3598 }
 0x2da   : > { %v897_v15 = vpack.c.bf16 %v3596_v12, %v3596_v12  ;;  %v896_v16 = vpack.c.bf16 %v3595_v13, %v3595_v13  ;;  %v3601_v17 = vunpack.i.h.bf16 %v3599_v0  ;;  %v3600_v18 = vunpack.i.l.bf16 %v3599_v0 }
 0x2dc   : > { %v908_v19 = vsel %vm415_vm1, %v896_v16, 0  ;;  %v954_v20 = vsel %vm415_vm1, %v897_v15, 0  ;;  %v899_v21 = vpack.c.bf16 %v3601_v17, %v3601_v17  ;;  %v898_v22 = vpack.c.bf16 %v3600_v18, %v3600_v18 }
 0x2dd   : > { %3340 = vmatpush3.bf16.xpose.msra.mxu1 %v908_v19  ;;  %3346 = vmatpush3.bf16.xpose.msra.mxu0 %v954_v20 }
 0x2de   : > { %3351 = vmatprep.subr.bf16.mxu0 %v3836_v14  ;;  %3357 = vmatprep.subr.bf16.mxu1 %v3836_v14  ;;  %v1000_v28 = vsel %vm415_vm1, %v898_v22, 0  ;;  %v1046_v29 = vsel %vm415_vm1, %v899_v21, 0 }
 0x2df   : > { %v3604_v23 = vpop.permute.xlu0 %3603 }
 0x2e0   : > { %v3606_v26 = vunpack.i.h.bf16 %v3604_v23  ;;  %v3605_v27 = vunpack.i.l.bf16 %v3604_v23 }
 0x2e1   : > { %v3609_v32 = vpop.permute.xlu1 %3608 }
 0x2e2   : > { %v901_v30 = vpack.c.bf16 %v3606_v26, %v3606_v26  ;;  %v900_v31 = vpack.c.bf16 %v3605_v27, %v3605_v27  ;;  %v3611_v35 = vunpack.i.h.bf16 %v3609_v32  ;;  %v3610_v38 = vunpack.i.l.bf16 %v3609_v32 }
 0x2e3   : > { %v1422_v50 = vpop.permute.xlu0 %1421 }
 0x2e4   : > { %3342 = vmatmul.mubr.msk.bf16.vlgmr.msra.gmra.mrb[12].mxu1 %vm415_vm1, %v864_v24  ;;  %3348 = vmatmul.mubr.msk.bf16.vlgmr.msra.gmra.mrb[4].mxu0 %vm415_vm1, %v865_v25  ;;  %v1092_v39 = vsel %vm415_vm1, %v900_v31, 0  ;;  %v1138_v40 = vsel %vm415_vm1, %v901_v30, 0  ;;  %v903_v41 = vpack.c.bf16 %v3611_v35, %v3611_v35  ;;  %v902_v44 = vpack.c.bf16 %v3610_v38, %v3610_v38 }
 0x2e5   : > { %3352 = vmatpush3.bf16.xpose.msra.mxu0 %v1000_v28  ;;  %3358 = vmatpush3.bf16.xpose.msra.mxu1 %v1046_v29  ;;  %v1371_v51 = vpop.permute.xlu1 %1370  ;;  %v1427_v54 = vsel %vm1376_vm10, %v1422_v50, 0  ;;  %v4210_v50 = vpack.c.bf16 %v4059_v58, %v4059_v58 }
 0x2e6   : > { %3353 = vmatprep.mubr.msk.bf16.mxu0 %vm3839_vm9, %v3836_v14  ;;  %3359 = vmatprep.mubr.msk.bf16.mxu1 %vm3839_vm9, %v3836_v14  ;;  %v1184_v36 = vsel %vm415_vm1, %v902_v44, 0  ;;  %v1230_v48 = vsel %vm415_vm1, %v903_v41, 0  ;;  %v1378_v55 = vsel %vm1376_vm10, %v1371_v51, 0 }
 0x2e7   : > { %3363 = vmatprep.subr.bf16.mxu0 %v3836_v14  ;;  %3369 = vmatprep.subr.bf16.mxu1 %v3836_v14 }
 0x2e9   : > { %v4214_v51 = vpop.permute.xlu1 %1470 }
 0x2ec   : > { %3354 = vmatmul.mubr.msk.bf16.vlgmr.msra.gmra.mrb[8].mxu0 %vm415_vm1, %v866_v33  ;;  %3360 = vmatmul.mubr.msk.bf16.vlgmr.msra.gmra.mrb[16].mxu1 %vm415_vm1, %v867_v34 }
 0x2ed   : > { %3364 = vmatpush3.bf16.xpose.msra.mxu0 %v1092_v39  ;;  %3370 = vmatpush3.bf16.xpose.msra.mxu1 %v1138_v40 }
 0x2ee   : > { %3365 = vmatprep.mubr.msk.bf16.mxu0 %vm3839_vm9, %v3836_v14  ;;  %3371 = vmatprep.mubr.msk.bf16.mxu1 %vm3839_vm9, %v3836_v14 }
 0x2ef   : > { %3375 = vmatprep.subr.bf16.mxu0 %v3836_v14  ;;  %3381 = vmatprep.subr.bf16.mxu1 %v3836_v14 }
 0x2f4   : > { %3366 = vmatmul.mubr.msk.bf16.vlgmr.msra.gmra.mrb[12].mxu0 %vm415_vm1, %v868_v45  ;;  %3372 = vmatmul.mubr.msk.bf16.vlgmr.msra.gmra.mrb[20].mxu1 %vm415_vm1, %v869_v46 }
 0x2f5   : > { %3376 = vmatpush3.bf16.xpose.msra.mxu0 %v1184_v36  ;;  %3382 = vmatpush3.bf16.xpose.msra.mxu1 %v1230_v48  ;;  %v4204_v48 = vpack.c.bf16 %v4061_v59, %v4061_v59 }
 0x2f6   : > { %3377 = vmatprep.mubr.msk.bf16.mxu0 %vm3839_vm9, %v3836_v14  ;;  %3383 = vmatprep.mubr.msk.bf16.mxu1 %vm3839_vm9, %v3836_v14 }
 0x2f7   : > { %3387 = vmatprep.subr.bf16.mxu0 %v3836_v14  ;;  %3393 = vmatprep.subr.bf16.mxu1 %v3836_v14 }
 0x2fc   : > { %3378 = vmatmul.mubr.msk.bf16.vlgmr.msra.gmra.mrb[16].mxu0 %vm415_vm1, %v870_v52  ;;  %3384 = vmatmul.mubr.msk.bf16.vlgmr.msra.gmra.mrb[24].mxu1 %vm415_vm1, %v871_v53  ;;  %v4216_v52 = vpop.permute.xlu1 %1519 }
 0x2fd   : > { %3388 = vmatpush3.bf16.msra.mxu0 %v1378_v55  ;;  %3394 = vmatpush3.bf16.msra.mxu1 %v1427_v54 }
 0x2fe   : > { %3389 = vmatprep.mubr.msk.bf16.mxu0 %vm3839_vm9, %v3836_v14  ;;  %3395 = vmatprep.mubr.msk.bf16.mxu1 %vm3839_vm9, %v3836_v14 }
 0x2ff   : > { %3399 = vmatprep.subr.bf16.mxu0 %v3836_v14  ;;  %3405 = vmatprep.subr.bf16.mxu1 %v3836_v14 }
 0x3b7   : > { %v944_v56 = vpop.f32.mrb[12].mxu1  ;;  %v990_v60 = vpop.f32.mrb[4].mxu0 }
 0x3b8   : > { %v3343_v61 = vpop.f32.mrb[13].mxu1  ;;  %v3349_v62 = vpop.f32.mrb[5].mxu0  ;;  %v1273_v63 = vsel %vm1272_vm11, %v944_v56, -inf  ;;  %v1276_v4 = vsel %vm1272_vm11, %v990_v60, -inf }
 0x3b9   : > { %v947_v5 = vpop.f32.mrb[14].mxu1  ;;  %v993_v11 = vpop.f32.mrb[6].mxu0  ;;  %1274 = vmax.xlane.f32.xlu0 %v1273_v63  ;;  %1277 = vmax.xlane.f32.xlu1 %v1276_v4 }
 0x3ba   : > { %v3344_v12 = vpop.f32.mrb[15].mxu1  ;;  %v3350_v13 = vpop.f32.mrb[7].mxu0 }
 0x3bf   : > { %v1036_v15 = vpop.f32.mrb[8].mxu0  ;;  %v1082_v16 = vpop.f32.mrb[16].mxu1 }
 0x3c0   : > { %v3355_v0 = vpop.f32.mrb[9].mxu0  ;;  %v3361_v17 = vpop.f32.mrb[17].mxu1  ;;  %v1279_v18 = vsel %vm1272_vm11, %v1036_v15, -inf  ;;  %v1282_v23 = vsel %vm1272_vm11, %v1082_v16, -inf }
 0x3c1   : > { %1280 = vmax.xlane.f32.xlu0 %v1279_v18  ;;  %v1039_v19 = vpop.f32.mrb[10].mxu0  ;;  %v1085_v20 = vpop.f32.mrb[18].mxu1 }
 0x3c2   : > { %v3356_v21 = vpop.f32.mrb[11].mxu0  ;;  %v3362_v22 = vpop.f32.mrb[19].mxu1 }
 0x3c5   : > { %1283 = vmax.xlane.f32.xlu0 %v1282_v23 }
 0x3c7   : > { %v1128_v24 = vpop.f32.mrb[12].mxu0  ;;  %v4189_v25 = vpop.f32.mrb[20].mxu1 }
 0x3c8   : > { %v3367_v26 = vpop.f32.mrb[13].mxu0  ;;  %v3373_v27 = vpop.f32.mrb[21].mxu1  ;;  %v1288_v28 = vsel %vm1272_vm11, %v4189_v25, -inf  ;;  %v1285_v29 = vsel %vm1272_vm11, %v1128_v24, -inf }
 0x3c9   : > { %v1131_v30 = vpop.f32.mrb[14].mxu0  ;;  %1289 = vmax.xlane.f32.xlu0 %v1288_v28  ;;  %v1177_v31 = vpop.f32.mrb[22].mxu1  ;;  %1286 = vmax.xlane.f32.xlu1 %v1285_v29  ;;  %v4240_v27 = vpack.c.bf16 %v4079_v2, %v4079_v2  ;;  %v4244_v28 = vpack.c.bf16 %v4077_v1, %v4077_v1 }
 0x3ca   : > { %v3368_v32 = vpop.f32.mrb[15].mxu0  ;;  %v3374_v33 = vpop.f32.mrb[23].mxu1 }
 0x3cf   : > { %v4194_v34 = vpop.f32.mrb[16].mxu0  ;;  %v4196_v35 = vpop.f32.mrb[24].mxu1 }
 0x3d0   : > { %v3379_v38 = vpop.f32.mrb[17].mxu0  ;;  %v3385_v39 = vpop.f32.mrb[25].mxu1  ;;  %v1294_v40 = vsel %vm1272_vm11, %v4196_v35, -inf  ;;  %v1291_v41 = vsel %vm1272_vm11, %v4194_v34, -inf }
 0x3d1   : > { %v1223_v44 = vpop.f32.mrb[18].mxu0  ;;  %1295 = vmax.xlane.f32.xlu0 %v1294_v40  ;;  %v1269_v45 = vpop.f32.mrb[26].mxu1  ;;  %1292 = vmax.xlane.f32.xlu1 %v1291_v41 }
 0x3d2   : > { %v3380_v46 = vpop.f32.mrb[19].mxu0  ;;  %v3386_v36 = vpop.f32.mrb[27].mxu1 }
 0x3e2   : > { %1617 = vrot.lane.b32.xlu1 %v4204_v48, %s3838_s14 }
 0x3e7   : > { %1568 = vrot.lane.b32.xlu0 %v4210_v50, %s3838_s14 }
 0x446   : > { %v1275_v53 = vpop.xlane.xlu0 %1274  ;;  %v1278_v54 = vpop.xlane.xlu1 %1277 }
 0x447   : > { %v1297_v55 = vsub.f32 %v944_v56, %v1275_v53  ;;  %v1298_v61 = vsub.f32 %v990_v60, %v1278_v54 }
 0x449   : > { %v1305_v62 = vmul.f32 1.442695, %v1297_v55  ;;  %v1307_v63 = vmul.f32 1.442695, %v1298_v61 }
 0x44b   : > { %3673 = vpow2.f32 %v1305_v62 }
 0x44c   : > { %3675 = vpow2.f32 %v1307_v63 }
 0x44e   : > { %v1281_v4 = vpop.xlane.xlu0 %1280 }
 0x44f   : > { %v1299_v5 = vsub.f32 %v1036_v15, %v1281_v4 }
 0x451   : > { %v1309_v11 = vmul.f32 1.442695, %v1299_v5  ;;  %v1525_v5 = vsel %vm1376_vm10, %v4216_v52, 0 }
 0x452   : > { %v1284_v12 = vpop.xlane.xlu0 %1283 }
 0x453   : > { %3677 = vpow2.f32 %v1309_v11  ;;  %v1300_v13 = vsub.f32 %v1082_v16, %v1284_v12 }
 0x455   : > { %v4218_v0 = vpop.eup %3673  ;;  %v1311_v17 = vmul.f32 1.442695, %v1300_v13 }
 0x456   : > { %v4220_v18 = vpop.eup %3675  ;;  %v1287_v19 = vpop.xlane.xlu1 %1286  ;;  %v1321_v56 = vsel %vm1272_vm11, %v4218_v0, 0.0 }
 0x457   : > { %3679 = vpow2.f32 %v1311_v17  ;;  %v1301_v60 = vsub.f32 %v1128_v24, %v1287_v19  ;;  %1322 = vadd.xlane.f32.xlu1 %v1321_v56  ;;  %v1324_v20 = vsel %vm1272_vm11, %v4220_v18, 0.0  ;;  %v1290_v29 = vpop.xlane.xlu0 %1289 }
 0x458   : > { %1325 = vadd.xlane.f32.xlu0 %v1324_v20  ;;  %v1302_v30 = vsub.f32 %v4189_v25, %v1290_v29 }
 0x459   : > { %v1313_v15 = vmul.f32 1.442695, %v1301_v60 }
 0x45a   : > { %v1315_v33 = vmul.f32 1.442695, %v1302_v30 }
 0x45b   : > { %3681 = vpow2.f32 %v1313_v15 }
 0x45c   : > { %3683 = vpow2.f32 %v1315_v33 }
 0x45d   : > { %v4226_v21 = vpop.eup %3677 }
 0x45e   : > { %v1327_v16 = vsel %vm1272_vm11, %v4226_v21, 0.0  ;;  %v1296_v31 = vpop.xlane.xlu0 %1295  ;;  %v1293_v32 = vpop.xlane.xlu1 %1292 }
 0x45f   : > { %1328 = vadd.xlane.f32.xlu1 %v1327_v16  ;;  %v1304_v38 = vsub.f32 %v4196_v35, %v1296_v31  ;;  %v1303_v39 = vsub.f32 %v4194_v34, %v1293_v32 }
 0x461   : > { %v4230_v22 = vpop.eup %3679  ;;  %v1319_v40 = vmul.f32 1.442695, %v1304_v38  ;;  %v1317_v41 = vmul.f32 1.442695, %v1303_v39 }
 0x462   : > { %v1330_v23 = vsel %vm1272_vm11, %v4230_v22, 0.0  ;;  %v1618_v36 = vpop.permute.xlu1 %1617  ;;  %v1569_v53 = vpop.permute.xlu0 %1568 }
 0x463   : > { %1331 = vadd.xlane.f32.xlu0 %v1330_v23  ;;  %3685 = vpow2.f32 %v1319_v40  ;;  %v1623_v56 = vsel %vm1376_vm10, %v1618_v36, 0 }
 0x464   : > { %3687 = vpow2.f32 %v1317_v41 }
 0x465   : > { %v4234_v24 = vpop.eup %3681 }
 0x466   : > { %v1333_v26 = vsel %vm1272_vm11, %v4234_v24, 0.0  ;;  %v4253_v44 = vpop.eup %3683 }
 0x467   : > { %1334 = vadd.xlane.f32.xlu1 %v1333_v26  ;;  %v1336_v45 = vsel %vm1272_vm11, %v4253_v44, 0.0 }
 0x46d   : > { %v4257_v46 = vpop.eup %3685 }
 0x46e   : > { %v4259_v25 = vpop.eup %3687  ;;  %v1342_v35 = vsel %vm1272_vm11, %v4257_v46, 0.0 }
 0x46f   : > { %v1339_v34 = vsel %vm1272_vm11, %v4259_v25, 0.0 }
 0x478   : > { %1715 = vrot.lane.b32.xlu1 %v4240_v27, %s3838_s14 }
 0x479   : > { %1666 = vrot.lane.b32.xlu0 %v4244_v28, %s3838_s14 }
 0x498   : > { %1337 = vadd.xlane.f32.xlu0 %v1336_v45 }
 0x49c   : > { %1343 = vadd.xlane.f32.xlu0 %v1342_v35  ;;  %1340 = vadd.xlane.f32.xlu1 %v1339_v34 }
 0x4ad   : > { %3618 = vrot.lane.b32.xlu1 %v4043_v49, %s3840_s16 }
 0x4b1   : > { %3628 = vrot.lane.b32.xlu1 %v4057_v57, %s3840_s16 }
 0x4b2   : > { %3613 = vrot.lane.b32.xlu0 %v4043_v49, %s3835_s21 }
 0x4b5   : > { %3638 = vrot.lane.b32.xlu1 %v4083_v3, %s3840_s16 }
 0x4b6   : > { %3623 = vrot.lane.b32.xlu0 %v4057_v57, %s3835_s21 }
 0x4b9   : > { %3648 = vrot.lane.b32.xlu1 %v4097_v6, %s3840_s16  ;;  %s4558_s16 = scalar_lea.hbm %s4612_s9, %s3255_s28 }
 0x4ba   : > { %3633 = vrot.lane.b32.xlu0 %v4083_v3, %s3835_s21 }
 0x4bd   : > { %2375 = vrot.lane.b32.xlu1 %v4109_v8, %s3835_s21 }
 0x4be   : > { %3643 = vrot.lane.b32.xlu0 %v4097_v6, %s3835_s21  ;;  %v1476_v6 = vsel %vm1376_vm10, %v4214_v51, 0 }
 0x4e4   : > { %v1323_v54 = vpop.xlane.xlu1 %1322 }
 0x4e5   : > { %v1326_v49 = vpop.xlane.xlu0 %1325  ;;  %3689 = vrcp.f32 %v1323_v54 }
 0x4e6   : > { %3691 = vrcp.f32 %v1326_v49 }
 0x4ec   : > { %v1329_v55 = vpop.xlane.xlu1 %1328 }
 0x4ed   : > { %3693 = vrcp.f32 %v1329_v55 }
 0x4ef   : > { %v3690_v57 = vpop.eup %3689 }
 0x4f0   : > { %v3692_v61 = vpop.eup %3691  ;;  %v1353_v62 = vmul.f32 %v3690_v57, %v4218_v0  ;;  %v1332_v63 = vpop.xlane.xlu0 %1331  ;;  %v1574_v0 = vsel %vm1376_vm10, %v1569_v53, 0 }
 0x4f1   : > { %v1354_v3 = vmul.f32 %v3692_v61, %v4220_v18  ;;  %3695 = vrcp.f32 %v1332_v63 }
 0x4f2   : > { %v1361_v8 = vpack.c.bf16 %v1353_v62, %v1353_v62 }
 0x4f3   : > { %v1362_v4 = vpack.c.bf16 %v1354_v3, %v1354_v3 }
 0x4f4   : > { %3390 = vmatmul.mubr.msk.bf16.vlgmr.msra.gmra.mrb[20].mxu0 %vm1372_vm12, %v1361_v8  ;;  %v1335_v11 = vpop.xlane.xlu1 %1334  ;;  %v1667_v20 = vpop.permute.xlu0 %1666 }
 0x4f5   : > { %3396 = vmatmul.mubr.msk.bf16.vlgmr.msra.gmra.mrb[28].mxu1 %vm1372_vm12, %v1362_v4  ;;  %3400 = vmatpush3.bf16.msra.mxu0 %v1476_v6  ;;  %3697 = vrcp.f32 %v1335_v11 }
 0x4f6   : > { %3406 = vmatpush3.bf16.msra.mxu1 %v1525_v5  ;;  %3401 = vmatprep.mubr.msk.bf16.mxu0 %vm3839_vm9, %v3836_v14 }
 0x4f7   : > { %v3694_v12 = vpop.eup %3693  ;;  %3411 = vmatprep.subr.bf16.mxu0 %v3836_v14  ;;  %3407 = vmatprep.mubr.msk.bf16.mxu1 %vm3839_vm9, %v3836_v14 }
 0x4f8   : > { %v1355_v51 = vmul.f32 %v3694_v12, %v4226_v21  ;;  %3417 = vmatprep.subr.bf16.mxu1 %v3836_v14  ;;  %v1672_v21 = vsel %vm1376_vm10, %v1667_v20, 0 }
 0x4fa   : > { %v1363_v52 = vpack.c.bf16 %v1355_v51, %v1355_v51 }
 0x4fb   : > { %v3696_v13 = vpop.eup %3695 }
 0x4fc   : > { %v1356_v17 = vmul.f32 %v3696_v13, %v4230_v22  ;;  %3402 = vmatmul.mubr.msk.bf16.vlgmr.msra.gmra.mrb[24].mxu0 %vm1372_vm12, %v1363_v52  ;;  %v1716_v22 = vpop.permute.xlu1 %1715 }
 0x4fd   : > { %3412 = vmatpush3.bf16.msra.mxu0 %v1574_v0  ;;  %3413 = vmatprep.mubr.msk.bf16.mxu0 %vm3839_vm9, %v3836_v14  ;;  %v1721_v39 = vsel %vm1376_vm10, %v1716_v22, 0 }
 0x4fe   : > { %v1364_v18 = vpack.c.bf16 %v1356_v17, %v1356_v17  ;;  %3423 = vmatprep.subr.bf16.mxu0 %v3836_v14 }
 0x4ff   : > { %v3698_v19 = vpop.eup %3697 }
 0x500   : > { %3408 = vmatmul.mubr.msk.bf16.vlgmr.msra.gmra.mrb[32].mxu1 %vm1372_vm12, %v1364_v18  ;;  %v1357_v60 = vmul.f32 %v3698_v19, %v4234_v24 }
 0x501   : > { %3418 = vmatpush3.bf16.msra.mxu1 %v1623_v56  ;;  %3419 = vmatprep.mubr.msk.bf16.mxu1 %vm3839_vm9, %v3836_v14 }
 0x502   : > { %3429 = vmatprep.subr.bf16.mxu1 %v3836_v14  ;;  %v1365_v15 = vpack.c.bf16 %v1357_v60, %v1357_v60 }
 0x504   : > { %3414 = vmatmul.mubr.msk.bf16.vlgmr.msra.gmra.mrb[28].mxu0 %vm1372_vm12, %v1365_v15 }
 0x505   : > { %3424 = vmatpush3.bf16.msra.mxu0 %v1672_v21  ;;  %3425 = vmatprep.mubr.msk.bf16.mxu0 %vm3839_vm9, %v3836_v14 }
 0x506   : > { %3435 = vmatprep.subr.bf16.mxu0 %v3836_v14 }
 0x525   : > { %v1338_v16 = vpop.xlane.xlu0 %1337 }
 0x526   : > { %3699 = vrcp.f32 %v1338_v16 }
 0x529   : > { %v1344_v23 = vpop.xlane.xlu0 %1343  ;;  %v1341_v24 = vpop.xlane.xlu1 %1340 }
 0x52a   : > { %3701 = vrcp.f32 %v1344_v23 }
 0x52b   : > { %3703 = vrcp.f32 %v1341_v24 }
 0x52d   : > { %v3614_v26 = vpop.permute.xlu0 %3613  ;;  %v3619_v36 = vpop.permute.xlu1 %3618 }
 0x52e   : > { %v3615_v31 = vunpack.i.l.bf16 %v3614_v26  ;;  %v3616_v41 = vunpack.i.h.bf16 %v3614_v26  ;;  %v3620_v55 = vunpack.i.l.bf16 %v3619_v36  ;;  %v3621_v63 = vunpack.i.h.bf16 %v3619_v36 }
 0x52f   : > { %v3221_v36 = vmul.f32 -1.442695, %v4037_v37 }
 0x530   : > { %v3700_v29 = vpop.eup %3699  ;;  %v1903_v45 = vpack.c.bf16 %v3615_v31, %v3615_v31  ;;  %v1904_v53 = vpack.c.bf16 %v3616_v41, %v3616_v41  ;;  %v1871_v3 = vpack.c.bf16 %v3620_v55, %v3620_v55  ;;  %v1872_v11 = vpack.c.bf16 %v3621_v63, %v3621_v63 }
 0x531   : > { %v1358_v30 = vmul.f32 %v3700_v29, %v4253_v44  ;;  %v3624_v34 = vpop.permute.xlu0 %3623  ;;  %v3629_v8 = vpop.permute.xlu1 %3628 }
 0x532   : > { %v3625_v54 = vunpack.i.l.bf16 %v3624_v34  ;;  %v1915_v49 = vsel %vm415_vm1, %v1903_v45, 0  ;;  %v1961_v61 = vsel %vm415_vm1, %v1904_v53, 0  ;;  %v3630_v12 = vunpack.i.l.bf16 %v3629_v8 }
 0x533   : > { %v1366_v32 = vpack.c.bf16 %v1358_v30, %v1358_v30  ;;  %v3631_v17 = vunpack.i.h.bf16 %v3629_v8  ;;  %v3222_v53 = vmul.f32 -1.442695, %v4039_v47 }
 0x534   : > { %v3702_v33 = vpop.eup %3701  ;;  %v1905_v57 = vpack.c.bf16 %v3625_v54, %v3625_v54  ;;  %v1873_v18 = vpack.c.bf16 %v3630_v12, %v3630_v12 }
 0x535   : > { %v3704_v38 = vpop.eup %3703  ;;  %3420 = vmatmul.mubr.msk.bf16.vlgmr.msra.gmra.mrb[36].mxu1 %vm1372_vm12, %v1366_v32  ;;  %v1360_v35 = vmul.f32 %v3702_v33, %v4257_v46  ;;  %v3626_v46 = vunpack.i.h.bf16 %v3624_v34  ;;  %v3634_v62 = vpop.permute.xlu0 %3633  ;;  %v1874_v15 = vpack.c.bf16 %v3631_v17, %v3631_v17  ;;  %v3219_v34 = vmul.f32 -1.442695, %v4025_v42 }
 0x536   : > { %v1359_v40 = vmul.f32 %v3704_v38, %v4259_v25  ;;  %3430 = vmatpush3.bf16.msra.mxu1 %v1721_v39  ;;  %3431 = vmatprep.mubr.msk.bf16.mxu1 %vm3839_vm9, %v3836_v14  ;;  %v3635_v6 = vunpack.i.l.bf16 %v3634_v62  ;;  %v2007_v5 = vsel %vm415_vm1, %v1905_v57, 0  ;;  %v3636_v51 = vunpack.i.h.bf16 %v3634_v62  ;;  %v3639_v19 = vpop.permute.xlu1 %3638 }
 0x537   : > { %3441 = vmatprep.subr.bf16.mxu1 %v3836_v14  ;;  %v1368_v25 = vpack.c.bf16 %v1360_v35, %v1360_v35  ;;  %v1906_v4 = vpack.c.bf16 %v3626_v46, %v3626_v46  ;;  %v3640_v21 = vunpack.i.l.bf16 %v3639_v19  ;;  %v3641_v24 = vunpack.i.h.bf16 %v3639_v19 }
 0x538   : > { %v1367_v44 = vpack.c.bf16 %v1359_v40, %v1359_v40  ;;  %v1907_v52 = vpack.c.bf16 %v3635_v6, %v3635_v6  ;;  %v1908_v56 = vpack.c.bf16 %v3636_v51, %v3636_v51  ;;  %3705 = vpow2.f32 %v3219_v34 }
 0x539   : > { %v2053_v13 = vsel %vm415_vm1, %v1906_v4, 0  ;;  %v3644_v0 = vpop.permute.xlu0 %3643  ;;  %v1875_v26 = vpack.c.bf16 %v3640_v21, %v3640_v21  ;;  %v1876_v32 = vpack.c.bf16 %v3641_v24, %v3641_v24 }
 0x53a   : > { %3426 = vmatmul.mubr.msk.bf16.vlgmr.msra.gmra.mrb[32].mxu0 %vm1372_vm12, %v1367_v44  ;;  %v3645_v60 = vunpack.i.l.bf16 %v3644_v0  ;;  %v2099_v20 = vsel %vm415_vm1, %v1907_v52, 0  ;;  %v3646_v16 = vunpack.i.h.bf16 %v3644_v0  ;;  %v2145_v23 = vsel %vm415_vm1, %v1908_v56, 0  ;;  %v3649_v29 = vpop.permute.xlu1 %3648 }
 0x53b   : > { %3436 = vmatpush3.bf16.xpose.msra.mxu0 %v1915_v49  ;;  %3437 = vmatprep.mubr.msk.bf16.mxu0 %vm3839_vm9, %v3836_v14  ;;  %v3650_v33 = vunpack.i.l.bf16 %v3649_v29  ;;  %v3651_v40 = vunpack.i.h.bf16 %v3649_v29  ;;  %v3220_v44 = vmul.f32 -1.442695, %v4027_v43 }
 0x53c   : > { %3447 = vmatprep.subr.bf16.mxu0 %v3836_v14  ;;  %v1909_v22 = vpack.c.bf16 %v3645_v60, %v3645_v60  ;;  %v1910_v30 = vpack.c.bf16 %v3646_v16, %v3646_v16 }
 0x53d   : > { %3432 = vmatmul.mubr.msk.bf16.vlgmr.msra.gmra.mrb[40].mxu1 %vm1372_vm12, %v1368_v25  ;;  %v1877_v41 = vpack.c.bf16 %v3650_v33, %v3650_v33  ;;  %v1878_v35 = vpack.c.bf16 %v3651_v40, %v3651_v40  ;;  %3707 = vpow2.f32 %v3220_v44  ;;  %v3224_v40 = vmul.f32 -1.442695, %v4061_v59 }
 0x53e   : > { %3443 = vmatprep.mubr.msk.bf16.mxu1 %vm3839_vm9, %v3836_v14  ;;  %v2191_v31 = vsel %vm415_vm1, %v1909_v22, 0  ;;  %v2237_v38 = vsel %vm415_vm1, %v1910_v30, 0  ;;  %v2376_v39 = vpop.permute.xlu1 %2375  ;;  %3709 = vpow2.f32 %v3221_v36 }
 0x53f   : > { %3442 = vmatpush3.bf16.xpose.msra.mxu1 %v1961_v61  ;;  %v2381_v45 = vsel %vm1376_vm10, %v2376_v39, 0  ;;  %3711 = vpow2.f32 %v3222_v53  ;;  %v3223_v39 = vmul.f32 -1.442695, %v4059_v58 }
 0x540   : > { %3453 = vmatprep.subr.bf16.mxu1 %v3836_v14 }
 0x542   : > { %3438 = vmatmul.mubr.msk.bf16.vlgmr.msra.gmra.mrb[36].mxu0 %vm415_vm1, %v1871_v3  ;;  %v3706_v54 = vpop.eup %3705 }
 0x543   : > { %3448 = vmatpush3.bf16.xpose.msra.mxu0 %v2007_v5  ;;  %3449 = vmatprep.mubr.msk.bf16.mxu0 %vm3839_vm9, %v3836_v14  ;;  %v1787_v25 = vadd.f32 1.0, %v3706_v54 }
 0x544   : > { %3459 = vmatprep.subr.bf16.mxu0 %v3836_v14 }
 0x545   : > { %3713 = vrcp.f32 %v1787_v25 }
 0x546   : > { %3444 = vmatmul.mubr.msk.bf16.vlgmr.msra.gmra.mrb[44].mxu1 %vm415_vm1, %v1872_v11 }
 0x547   : > { %3454 = vmatpush3.bf16.xpose.msra.mxu1 %v2053_v13  ;;  %3455 = vmatprep.mubr.msk.bf16.mxu1 %vm3839_vm9, %v3836_v14  ;;  %v3708_v49 = vpop.eup %3707 }
 0x548   : > { %3465 = vmatprep.subr.bf16.mxu1 %v3836_v14  ;;  %v1788_v55 = vadd.f32 1.0, %v3708_v49  ;;  %v3710_v46 = vpop.eup %3709 }
 0x549   : > { %v3712_v57 = vpop.eup %3711  ;;  %v1789_v61 = vadd.f32 1.0, %v3710_v46 }
 0x54a   : > { %3450 = vmatmul.mubr.msk.bf16.vlgmr.msra.gmra.mrb[40].mxu0 %vm415_vm1, %v1873_v18  ;;  %3715 = vrcp.f32 %v1788_v55  ;;  %v1790_v42 = vadd.f32 1.0, %v3712_v57 }
 0x54b   : > { %3460 = vmatpush3.bf16.xpose.msra.mxu0 %v2099_v20  ;;  %3461 = vmatprep.mubr.msk.bf16.mxu0 %vm3839_vm9, %v3836_v14  ;;  %3717 = vrcp.f32 %v1789_v61 }
 0x54c   : > { %3471 = vmatprep.subr.bf16.mxu0 %v3836_v14  ;;  %3719 = vrcp.f32 %v1790_v42 }
 0x54d   : > { %3721 = vpow2.f32 %v3223_v39 }
 0x54e   : > { %3456 = vmatmul.mubr.msk.bf16.vlgmr.msra.gmra.mrb[48].mxu1 %vm415_vm1, %v1874_v15  ;;  %3723 = vpow2.f32 %v3224_v40 }
 0x54f   : > { %3466 = vmatpush3.bf16.xpose.msra.mxu1 %v2145_v23  ;;  %3467 = vmatprep.mubr.msk.bf16.mxu1 %vm3839_vm9, %v3836_v14  ;;  %v4371_v8 = vpop.eup %3713 }
 0x550   : > { %3477 = vmatprep.subr.bf16.mxu1 %v3836_v14 }
 0x552   : > { %3462 = vmatmul.mubr.msk.bf16.vlgmr.msra.gmra.mrb[44].mxu0 %vm415_vm1, %v1875_v26 }
 0x553   : > { %3472 = vmatpush3.bf16.xpose.msra.mxu0 %v2191_v31  ;;  %3473 = vmatprep.mubr.msk.bf16.mxu0 %vm3839_vm9, %v3836_v14 }
 0x554   : > { %3483 = vmatprep.subr.bf16.mxu0 %v3836_v14  ;;  %v4373_v6 = vpop.eup %3715 }
 0x555   : > { %v4377_v20 = vpop.eup %3717 }
 0x556   : > { %3468 = vmatmul.mubr.msk.bf16.vlgmr.msra.gmra.mrb[52].mxu1 %vm415_vm1, %v1876_v32  ;;  %v4379_v16 = vpop.eup %3719 }
 0x557   : > { %3478 = vmatpush3.bf16.xpose.msra.mxu1 %v2237_v38  ;;  %3479 = vmatprep.mubr.msk.bf16.mxu1 %vm3839_vm9, %v3836_v14 }
 0x558   : > { %3489 = vmatprep.subr.bf16.mxu1 %v3836_v14 }
 0x55a   : > { %3474 = vmatmul.mubr.msk.bf16.vlgmr.msra.gmra.mrb[48].mxu0 %vm415_vm1, %v1877_v41  ;;  %v3225_v41 = vmul.f32 -1.442695, %v4077_v1 }
 0x55b   : > { %3484 = vmatpush3.bf16.msra.mxu0 %v2381_v45  ;;  %3485 = vmatprep.mubr.msk.bf16.mxu0 %vm3839_vm9, %v3836_v14  ;;  %v3226_v45 = vmul.f32 -1.442695, %v4079_v2 }
 0x55c   : > { %3495 = vmatprep.subr.bf16.mxu0 %v3836_v14  ;;  %3725 = vpow2.f32 %v3225_v41 }
 0x55d   : > { %3727 = vpow2.f32 %v3226_v45 }
 0x55e   : > { %3480 = vmatmul.mubr.msk.bf16.vlgmr.msra.gmra.mrb[56].mxu1 %vm415_vm1, %v1878_v35  ;;  %v3722_v35 = vpop.eup %3721 }
 0x55f   : > { %3491 = vmatprep.mubr.msk.bf16.mxu1 %vm3839_vm9, %v3836_v14  ;;  %v3724_v34 = vpop.eup %3723  ;;  %v1791_v44 = vadd.f32 1.0, %v3722_v35 }
 0x560   : > { %v1792_v36 = vadd.f32 1.0, %v3724_v34 }
 0x561   : > { %3729 = vrcp.f32 %v1791_v44 }
 0x562   : > { %3731 = vrcp.f32 %v1792_v36 }
 0x566   : > { %v3726_v53 = vpop.eup %3725 }
 0x567   : > { %v3728_v54 = vpop.eup %3727  ;;  %v1793_v49 = vadd.f32 1.0, %v3726_v53 }
 0x568   : > { %v1794_v58 = vadd.f32 1.0, %v3728_v54 }
 0x569   : > { %3733 = vrcp.f32 %v1793_v49 }
 0x56a   : > { %3735 = vrcp.f32 %v1794_v58 }
 0x56b   : > { %v4388_v55 = vpop.eup %3729 }
 0x56c   : > { %v4390_v46 = vpop.eup %3731 }
 0x5c7   : > { %v1414_v62 = vpop.f32.mrb[20].mxu0 }
 0x5c8   : > { %v1811_v43 = vmax.f32 %v1414_v62, 0.0  ;;  %v1463_v63 = vpop.f32.mrb[28].mxu1  ;;  %v3391_v3 = vpop.f32.mrb[21].mxu0 }
 0x5c9   : > { %v1812_v37 = vmax.f32 %v1463_v63, 0.0  ;;  %v3397_v47 = vpop.f32.mrb[29].mxu1  ;;  %v1417_v4 = vpop.f32.mrb[22].mxu0 }
 0x5ca   : > { %v1819_v5 = vmul.f32 %v4371_v8, %v1811_v43  ;;  %v1466_v11 = vpop.f32.mrb[30].mxu1  ;;  %v3392_v12 = vpop.f32.mrb[23].mxu0 }
 0x5cb   : > { %v1820_v51 = vmul.f32 %v4373_v6, %v1812_v37  ;;  %v3398_v52 = vpop.f32.mrb[31].mxu1  ;;  %v4394_v11 = vpop.eup %3733 }
 0x5cc   : > { %v4396_v52 = vpop.eup %3735 }
 0x5cd   : > { %v1835_v13 = vcombine.low %v1819_v5, %v1820_v51 }
 0x5cf   : > { %v1512_v0 = vpop.f32.mrb[24].mxu0 }
 0x5d0   : > { %v3403_v17 = vpop.f32.mrb[25].mxu0  ;;  %v1813_v19 = vmax.f32 %v1512_v0, 0.0 }
 0x5d1   : > { %v1515_v18 = vpop.f32.mrb[26].mxu0 }
 0x5d2   : > { %v3404_v56 = vpop.f32.mrb[27].mxu0  ;;  %v1821_v23 = vmul.f32 %v4377_v20, %v1813_v19 }
 0x5d3   : > { %v1561_v60 = vpop.f32.mrb[32].mxu1 }
 0x5d4   : > { %v1814_v15 = vmax.f32 %v1561_v60, 0.0  ;;  %v3409_v21 = vpop.f32.mrb[33].mxu1 }
 0x5d5   : > { %v1564_v22 = vpop.f32.mrb[34].mxu1 }
 0x5d6   : > { %v1822_v24 = vmul.f32 %v4379_v16, %v1814_v15  ;;  %v3410_v26 = vpop.f32.mrb[35].mxu1 }
 0x5d7   : > { %v1610_v30 = vpop.f32.mrb[28].mxu0 }
 0x5d8   : > { %v1836_v29 = vcombine.low %v1821_v23, %v1822_v24  ;;  %v3415_v31 = vpop.f32.mrb[29].mxu0  ;;  %v1815_v59 = vmax.f32 %v1610_v30, 0.0 }
 0x5d9   : > { %v1613_v33 = vpop.f32.mrb[30].mxu0 }
 0x5da   : > { %v1843_v32 = vpack.c.bf16 %v1836_v29, %v1835_v13  ;;  %v3416_v38 = vpop.f32.mrb[31].mxu0  ;;  %v1823_v61 = vmul.f32 %v4388_v55, %v1815_v59 }
 0x5dc   : > { %1845 = vst.msk [vmem:[#allocation3] sm:$0xff] %vm415_vm1, %v1843_v32 }
 0x608   : > { %v1659_v25 = vpop.f32.mrb[36].mxu1 }
 0x609   : > { %v1816_v1 = vmax.f32 %v1659_v25, 0.0  ;;  %v3421_v2 = vpop.f32.mrb[37].mxu1 }
 0x60a   : > { %v1662_v57 = vpop.f32.mrb[38].mxu1 }
 0x60b   : > { %v1824_v42 = vmul.f32 %v4390_v46, %v1816_v1  ;;  %v3422_v62 = vpop.f32.mrb[39].mxu1 }
 0x60d   : > { %v1837_v43 = vcombine.low %v1823_v61, %v1824_v42  ;;  %v1708_v63 = vpop.f32.mrb[32].mxu0 }
 0x60e   : > { %v3427_v3 = vpop.f32.mrb[33].mxu0  ;;  %v1817_v37 = vmax.f32 %v1708_v63, 0.0 }
 0x60f   : > { %v1711_v47 = vpop.f32.mrb[34].mxu0 }
 0x610   : > { %v3428_v4 = vpop.f32.mrb[35].mxu0  ;;  %v1757_v5 = vpop.f32.mrb[40].mxu1  ;;  %v1825_v0 = vmul.f32 %v4394_v11, %v1817_v37 }
 0x611   : > { %v1818_v12 = vmax.f32 %v1757_v5, 0.0  ;;  %v3433_v51 = vpop.f32.mrb[41].mxu1 }
 0x612   : > { %v1760_v13 = vpop.f32.mrb[42].mxu1 }
 0x613   : > { %v1826_v17 = vmul.f32 %v4396_v52, %v1818_v12  ;;  %v3434_v18 = vpop.f32.mrb[43].mxu1 }
 0x615   : > { %v1838_v19 = vcombine.low %v1825_v0, %v1826_v17  ;;  %v1951_v56 = vpop.f32.mrb[36].mxu0 }
 0x616   : > { %v3439_v60 = vpop.f32.mrb[37].mxu0  ;;  %v2279_v15 = vsel %vm1272_vm11, %v1951_v56, -inf }
 0x617   : > { %v1844_v21 = vpack.c.bf16 %v1838_v19, %v1837_v43  ;;  %2280 = vmax.xlane.f32.xlu0 %v2279_v15  ;;  %v1954_v22 = vpop.f32.mrb[38].mxu0 }
 0x618   : > { %v3440_v23 = vpop.f32.mrb[39].mxu0 }
 0x619   : > { %1846 = vst.msk [vmem:[#allocation3 + $0x8] sm:$0xff] %vm415_vm1, %v1844_v21  ;;  %v1997_v24 = vpop.f32.mrb[44].mxu1 }
 0x61a   : > { %v3445_v26 = vpop.f32.mrb[45].mxu1  ;;  %v2282_v29 = vsel %vm1272_vm11, %v1997_v24, -inf }
 0x61b   : > { %2283 = vmax.xlane.f32.xlu1 %v2282_v29  ;;  %v2000_v30 = vpop.f32.mrb[46].mxu1 }
 0x61c   : > { %v3446_v31 = vpop.f32.mrb[47].mxu1 }
 0x61d   : > { %v2043_v32 = vpop.f32.mrb[40].mxu0 }
 0x61e   : > { %v3451_v33 = vpop.f32.mrb[41].mxu0  ;;  %v2285_v38 = vsel %vm1272_vm11, %v2043_v32, -inf }
 0x61f   : > { %2286 = vmax.xlane.f32.xlu0 %v2285_v38  ;;  %v2046_v39 = vpop.f32.mrb[42].mxu0 }
 0x620   : > { %v3452_v40 = vpop.f32.mrb[43].mxu0 }
 0x621   : > { %v2089_v41 = vpop.f32.mrb[48].mxu1 }
 0x622   : > { %v3457_v45 = vpop.f32.mrb[49].mxu1  ;;  %v2288_v35 = vsel %vm1272_vm11, %v2089_v41, -inf }
 0x623   : > { %v2092_v34 = vpop.f32.mrb[50].mxu1  ;;  %2289 = vmax.xlane.f32.xlu0 %v2288_v35 }
 0x624   : > { %v3458_v44 = vpop.f32.mrb[51].mxu1 }
 0x625   : > { %v4405_v36 = vpop.f32.mrb[44].mxu0 }
 0x626   : > { %v3463_v53 = vpop.f32.mrb[45].mxu0  ;;  %v2291_v54 = vsel %vm1272_vm11, %v4405_v36, -inf }
 0x627   : > { %2292 = vmax.xlane.f32.xlu1 %v2291_v54  ;;  %v2138_v49 = vpop.f32.mrb[46].mxu0 }
 0x628   : > { %v3464_v58 = vpop.f32.mrb[47].mxu0 }
 0x629   : > { %v4409_v59 = vpop.f32.mrb[52].mxu1 }
 0x62a   : > { %v3469_v25 = vpop.f32.mrb[53].mxu1  ;;  %v2294_v1 = vsel %vm1272_vm11, %v4409_v59, -inf }
 0x62b   : > { %v2184_v2 = vpop.f32.mrb[54].mxu1  ;;  %2295 = vmax.xlane.f32.xlu0 %v2294_v1 }
 0x62c   : > { %v3470_v57 = vpop.f32.mrb[55].mxu1 }
 0x62d   : > { %v2227_v61 = vpop.f32.mrb[48].mxu0 }
 0x62e   : > { %v3475_v42 = vpop.f32.mrb[49].mxu0  ;;  %v2297_v62 = vsel %vm1272_vm11, %v2227_v61, -inf }
 0x62f   : > { %2298 = vmax.xlane.f32.xlu1 %v2297_v62  ;;  %v2230_v43 = vpop.f32.mrb[50].mxu0 }
 0x630   : > { %v3476_v63 = vpop.f32.mrb[51].mxu0 }
 0x631   : > { %v2273_v3 = vpop.f32.mrb[56].mxu1 }
 0x632   : > { %v3481_v37 = vpop.f32.mrb[57].mxu1  ;;  %v2300_v47 = vsel %vm1272_vm11, %v2273_v3, -inf }
 0x633   : > { %v2276_v4 = vpop.f32.mrb[58].mxu1  ;;  %2301 = vmax.xlane.f32.xlu0 %v2300_v47 }
 0x634   : > { %v3482_v5 = vpop.f32.mrb[59].mxu1 }
 0x640   : > { %2471 = vrot.lane.b32.xlu1 %v4115_v9, %s3835_s21 }
 0x644   : > { %2519 = vrot.lane.b32.xlu1 %v4121_v10, %s3835_s21 }
 0x649   : > { %2423 = vrot.lane.b32.xlu0 %v4101_v7, %s3835_s21 }
 0x6a4   : > { %v2281_v12 = vpop.xlane.xlu0 %2280 }
 0x6a5   : > { %v2303_v51 = vsub.f32 %v1951_v56, %v2281_v12 }
 0x6a7   : > { %v2311_v13 = vmul.f32 1.442695, %v2303_v51 }
 0x6a8   : > { %v2284_v0 = vpop.xlane.xlu1 %2283 }
 0x6a9   : > { %3737 = vpow2.f32 %v2311_v13  ;;  %v2304_v17 = vsub.f32 %v1997_v24, %v2284_v0 }
 0x6ab   : > { %v2313_v18 = vmul.f32 1.442695, %v2304_v17 }
 0x6ac   : > { %v2287_v19 = vpop.xlane.xlu0 %2286 }
 0x6ad   : > { %3739 = vpow2.f32 %v2313_v18  ;;  %v2305_v60 = vsub.f32 %v2043_v32, %v2287_v19 }
 0x6af   : > { %v2315_v15 = vmul.f32 1.442695, %v2305_v60 }
 0x6b0   : > { %v2290_v21 = vpop.xlane.xlu0 %2289 }
 0x6b1   : > { %3741 = vpow2.f32 %v2315_v15  ;;  %v2306_v9 = vsub.f32 %v2089_v41, %v2290_v21 }
 0x6b3   : > { %v3738_v22 = vpop.eup %3737  ;;  %v2317_v23 = vmul.f32 1.442695, %v2306_v9 }
 0x6b4   : > { %v2327_v10 = vsel %vm1272_vm11, %v3738_v22, 0.0  ;;  %v2293_v39 = vpop.xlane.xlu1 %2292 }
 0x6b5   : > { %3743 = vpow2.f32 %v2317_v23  ;;  %2328 = vadd.xlane.f32.xlu1 %v2327_v10  ;;  %v2307_v40 = vsub.f32 %v4405_v36, %v2293_v39 }
 0x6b7   : > { %v3740_v7 = vpop.eup %3739  ;;  %v2319_v35 = vmul.f32 1.442695, %v2307_v40 }
 0x6b8   : > { %v2330_v56 = vsel %vm1272_vm11, %v3740_v7, 0.0  ;;  %v2296_v24 = vpop.xlane.xlu0 %2295 }
 0x6b9   : > { %2331 = vadd.xlane.f32.xlu0 %v2330_v56  ;;  %v2308_v45 = vsub.f32 %v4409_v59, %v2296_v24  ;;  %3745 = vpow2.f32 %v2319_v35 }
 0x6bb   : > { %v4423_v26 = vpop.eup %3741  ;;  %v2321_v44 = vmul.f32 1.442695, %v2308_v45 }
 0x6bc   : > { %v2333_v29 = vsel %vm1272_vm11, %v4423_v26, 0.0  ;;  %v2299_v41 = vpop.xlane.xlu1 %2298 }
 0x6bd   : > { %2334 = vadd.xlane.f32.xlu1 %v2333_v29  ;;  %v2309_v34 = vsub.f32 %v2227_v61, %v2299_v41  ;;  %3747 = vpow2.f32 %v2321_v44 }
 0x6bf   : > { %v4427_v30 = vpop.eup %3743  ;;  %v2323_v53 = vmul.f32 1.442695, %v2309_v34 }
 0x6c0   : > { %v2302_v31 = vpop.xlane.xlu0 %2301  ;;  %v2336_v32 = vsel %vm1272_vm11, %v4427_v30, 0.0  ;;  %v2472_v57 = vpop.permute.xlu1 %2471 }
 0x6c1   : > { %2337 = vadd.xlane.f32.xlu0 %v2336_v32  ;;  %v2310_v54 = vsub.f32 %v2273_v3, %v2302_v31  ;;  %3749 = vpow2.f32 %v2323_v53  ;;  %v2477_v5 = vsel %vm1376_vm10, %v2472_v57, 0 }
 0x6c3   : > { %v2325_v49 = vmul.f32 1.442695, %v2310_v54 }
 0x6c4   : > { %v2424_v33 = vpop.permute.xlu0 %2423  ;;  %v2520_v61 = vpop.permute.xlu1 %2519 }
 0x6c5   : > { %v2429_v38 = vsel %vm1376_vm10, %v2424_v33, 0  ;;  %3751 = vpow2.f32 %v2325_v49  ;;  %v2525_v51 = vsel %vm1376_vm10, %v2520_v61, 0 }
 0x6c6   : > { %3490 = vmatpush3.bf16.msra.mxu1 %v2429_v38 }
 0x6c7   : > { %3501 = vmatprep.subr.bf16.mxu1 %v3836_v14 }
 0x6ce   : > { %2615 = vrot.lane.b32.xlu1 %v4204_v48, %s3835_s21  ;;  %v4439_v48 = vpop.eup %3745 }
 0x6cf   : > { %v4441_v58 = vpop.eup %3747 }
 0x6d0   : > { %v4445_v36 = vpop.eup %3749  ;;  %v2342_v59 = vsel %vm1272_vm11, %v4441_v58, 0.0 }
 0x6d1   : > { %v2345_v25 = vsel %vm1272_vm11, %v4445_v36, 0.0  ;;  %v4451_v1 = vpop.eup %3751 }
 0x6d2   : > { %v2348_v2 = vsel %vm1272_vm11, %v4451_v1, 0.0 }
 0x6d7   : > { %2567 = vrot.lane.b32.xlu0 %v4210_v50, %s3835_s21  ;;  %v2339_v50 = vsel %vm1272_vm11, %v4439_v48, 0.0 }
 0x6f2   : > { %2340 = vadd.xlane.f32.xlu1 %v2339_v50 }
 0x6f6   : > { %2343 = vadd.xlane.f32.xlu0 %v2342_v59  ;;  %2346 = vadd.xlane.f32.xlu1 %v2345_v25 }
 0x6fa   : > { %2349 = vadd.xlane.f32.xlu0 %v2348_v2 }
 0x707   : > { %2711 = vrot.lane.b32.xlu1 %v4240_v27, %s3835_s21 }
 0x710   : > { %2663 = vrot.lane.b32.xlu0 %v4244_v28, %s3835_s21 }
 0x742   : > { %v2329_v42 = vpop.xlane.xlu1 %2328 }
 0x743   : > { %3753 = vrcp.f32 %v2329_v42 }
 0x746   : > { %v2332_v62 = vpop.xlane.xlu0 %2331 }
 0x747   : > { %3755 = vrcp.f32 %v2332_v62 }
 0x74a   : > { %v2335_v43 = vpop.xlane.xlu1 %2334 }
 0x74b   : > { %3757 = vrcp.f32 %v2335_v43 }
 0x74d   : > { %v3754_v63 = vpop.eup %3753 }
 0x74e   : > { %v2359_v3 = vmul.f32 %v3754_v63, %v3738_v22  ;;  %v2338_v37 = vpop.xlane.xlu0 %2337  ;;  %v2616_v15 = vpop.permute.xlu1 %2615 }
 0x74f   : > { %3759 = vrcp.f32 %v2338_v37  ;;  %v2621_v9 = vsel %vm1376_vm10, %v2616_v15, 0  ;;  %v3671_v15 = vld [vmem:[%s4609_s6 + $0x10] sm:$0xff]  }
 0x750   : > { %v2367_v47 = vpack.c.bf16 %v2359_v3, %v2359_v3 }
 0x751   : > { %v3756_v4 = vpop.eup %3755 }
 0x752   : > { %v2360_v27 = vmul.f32 %v3756_v4, %v3740_v7  ;;  %3486 = vmatmul.mubr.msk.bf16.vlgmr.msra.gmra.mrb[52].mxu0 %vm1372_vm12, %v2367_v47  ;;  %v2568_v0 = vpop.permute.xlu0 %2567  ;;  %v3669_v47 = vld [vmem:[%s4609_s6] sm:$0xff]  }
 0x753   : > { %3496 = vmatpush3.bf16.msra.mxu0 %v2477_v5  ;;  %3497 = vmatprep.mubr.msk.bf16.mxu0 %vm3839_vm9, %v3836_v14  ;;  %v2573_v60 = vsel %vm1376_vm10, %v2568_v0, 0 }
 0x754   : > { %v2368_v28 = vpack.c.bf16 %v2360_v27, %v2360_v27  ;;  %3507 = vmatprep.subr.bf16.mxu0 %v3836_v14 }
 0x755   : > { %v3758_v12 = vpop.eup %3757 }
 0x756   : > { %v2361_v13 = vmul.f32 %v3758_v12, %v4423_v26  ;;  %3492 = vmatmul.mubr.msk.bf16.vlgmr.msra.gmra.mrb[60].mxu1 %vm1372_vm12, %v2368_v28 }
 0x757   : > { %3502 = vmatpush3.bf16.msra.mxu1 %v2525_v51  ;;  %3503 = vmatprep.mubr.msk.bf16.mxu1 %vm3839_vm9, %v3836_v14 }
 0x758   : > { %v2369_v17 = vpack.c.bf16 %v2361_v13, %v2361_v13  ;;  %3513 = vmatprep.subr.bf16.mxu1 %v3836_v14 }
 0x759   : > { %v3760_v18 = vpop.eup %3759 }
 0x75a   : > { %v2362_v19 = vmul.f32 %v3760_v18, %v4427_v30  ;;  %3498 = vmatmul.mubr.msk.bf16.vlgmr.msra.gmra.mrb[56].mxu0 %vm1372_vm12, %v2369_v17 }
 0x75b   : > { %3508 = vmatpush3.bf16.msra.mxu0 %v2573_v60  ;;  %3509 = vmatprep.mubr.msk.bf16.mxu0 %vm3839_vm9, %v3836_v14  ;;  %v3670_v60 = vld [vmem:[%s4609_s6 + $0x8] sm:$0xff]  }
 0x75c   : > { %v2370_v21 = vpack.c.bf16 %v2362_v19, %v2362_v19  ;;  %3519 = vmatprep.subr.bf16.mxu0 %v3836_v14 }
 0x75e   : > { %3504 = vmatmul.mubr.msk.bf16.vlgmr.msra.gmra.mrb[64].mxu1 %vm1372_vm12, %v2370_v21 }
 0x75f   : > { %3514 = vmatpush3.bf16.msra.mxu1 %v2621_v9  ;;  %3515 = vmatprep.mubr.msk.bf16.mxu1 %vm3839_vm9, %v3836_v14 }
 0x760   : > { %3525 = vmatprep.subr.bf16.mxu1 %v3836_v14 }
 0x77f   : > { %v2341_v22 = vpop.xlane.xlu1 %2340 }
 0x780   : > { %3761 = vrcp.f32 %v2341_v22 }
 0x783   : > { %v2344_v23 = vpop.xlane.xlu0 %2343  ;;  %v2347_v10 = vpop.xlane.xlu1 %2346 }
 0x784   : > { %3763 = vrcp.f32 %v2344_v23 }
 0x785   : > { %3765 = vrcp.f32 %v2347_v10 }
 0x787   : > { %v2350_v7 = vpop.xlane.xlu0 %2349  ;;  %v2712_v38 = vpop.permute.xlu1 %2711 }
 0x788   : > { %3767 = vrcp.f32 %v2350_v7  ;;  %v2717_v45 = vsel %vm1376_vm10, %v2712_v38, 0  ;;  %v3672_v7 = vld [vmem:[%s4609_s6 + $0x18] sm:$0xff]  }
 0x78a   : > { %v3762_v56 = vpop.eup %3761 }
 0x78b   : > { %v2363_v26 = vmul.f32 %v3762_v56, %v4439_v48  ;;  %v2664_v24 = vpop.permute.xlu0 %2663 }
 0x78c   : > { %v2669_v33 = vsel %vm1376_vm10, %v2664_v24, 0 }
 0x78d   : > { %v2371_v29 = vpack.c.bf16 %v2363_v26, %v2363_v26 }
 0x78e   : > { %v3764_v30 = vpop.eup %3763 }
 0x78f   : > { %v3766_v31 = vpop.eup %3765  ;;  %v2364_v32 = vmul.f32 %v3764_v30, %v4441_v58  ;;  %3510 = vmatmul.mubr.msk.bf16.vlgmr.msra.gmra.mrb[60].mxu0 %vm1372_vm12, %v2371_v29 }
 0x790   : > { %3520 = vmatpush3.bf16.msra.mxu0 %v2669_v33  ;;  %3521 = vmatprep.mubr.msk.bf16.mxu0 %vm3839_vm9, %v3836_v14  ;;  %v2365_v39 = vmul.f32 %v3766_v31, %v4445_v36 }
 0x791   : > { %v2372_v40 = vpack.c.bf16 %v2364_v32, %v2364_v32  ;;  %3531 = vmatprep.subr.bf16.mxu0 %v3669_v47 }
 0x792   : > { %v3768_v41 = vpop.eup %3767  ;;  %v2373_v34 = vpack.c.bf16 %v2365_v39, %v2365_v39 }
 0x793   : > { %3516 = vmatmul.mubr.msk.bf16.vlgmr.msra.gmra.mrb[68].mxu1 %vm1372_vm12, %v2372_v40  ;;  %v2366_v35 = vmul.f32 %v3768_v41, %v4451_v1 }
 0x794   : > { %3526 = vmatpush3.bf16.msra.mxu1 %v2717_v45  ;;  %3527 = vmatprep.mubr.msk.bf16.mxu1 %vm3839_vm9, %v3836_v14 }
 0x795   : > { %v2374_v44 = vpack.c.bf16 %v2366_v35, %v2366_v35 }
 0x797   : > { %3522 = vmatmul.mubr.msk.bf16.vlgmr.msra.gmra.mrb[64].mxu0 %vm1372_vm12, %v2373_v34 }
 0x798   : > { %3532 = vmatpush3.bf16.msra.mxu0 %v3669_v47 }
 0x799   : > { %3533 = vmatprep.subr.bf16.mxu0 %v3670_v60 }
 0x79b   : > { %3528 = vmatmul.mubr.msk.bf16.vlgmr.msra.gmra.mrb[72].mxu1 %vm1372_vm12, %v2374_v44 }
 0x79c   : > { %3534 = vmatpush3.bf16.msra.mxu0 %v3670_v60 }
 0x79d   : > { %3535 = vmatprep.subr.bf16.mxu0 %v3671_v15 }
 0x7a0   : > { %3536 = vmatpush3.bf16.msra.mxu0 %v3671_v15 }
 0x7a1   : > { %3537 = vmatprep.subr.bf16.mxu0 %v3672_v7 }
 0x7a4   : > { %3538 = vmatpush3.bf16.msra.mxu0 %v3672_v7 }
 0x825   : > { %v2417_v53 = vpop.f32.mrb[52].mxu0 }
 0x826   : > { %v2759_v54 = vmax.f32 %v2417_v53, 0.0  ;;  %v3487_v49 = vpop.f32.mrb[53].mxu0 }
 0x827   : > { %v2420_v48 = vpop.f32.mrb[54].mxu0 }
 0x828   : > { %2775 = vrot.lane.b32.xlu0 %v2759_v54, %s3835_s21  ;;  %v3488_v58 = vpop.f32.mrb[55].mxu0 }
 0x829   : > { %v2465_v50 = vpop.f32.mrb[60].mxu1 }
 0x82a   : > { %v2760_v36 = vmax.f32 %v2465_v50, 0.0  ;;  %v3493_v59 = vpop.f32.mrb[61].mxu1 }
 0x82b   : > { %v2468_v25 = vpop.f32.mrb[62].mxu1 }
 0x82c   : > { %v3494_v14 = vpop.f32.mrb[63].mxu1  ;;  %2777 = vrot.lane.b32.xlu1 %v2760_v36, %s3835_s21  ;;  %v3243_v25 = vld [vmem:[%s4610_s7] ss:$0 sm:$0xff] }
 0x82d   : > { %v2513_v1 = vpop.f32.mrb[56].mxu0 }
 0x82e   : > { %v2761_v2 = vmax.f32 %v2513_v1, 0.0  ;;  %v3499_v57 = vpop.f32.mrb[57].mxu0 }
 0x82f   : > { %v2516_v61 = vpop.f32.mrb[58].mxu0 }
 0x830   : > { %2779 = vrot.lane.b32.xlu0 %v2761_v2, %s3835_s21  ;;  %v3500_v42 = vpop.f32.mrb[59].mxu0 }
 0x831   : > { %v2561_v62 = vpop.f32.mrb[64].mxu1 }
 0x832   : > { %v2762_v43 = vmax.f32 %v2561_v62, 0.0  ;;  %v3505_v63 = vpop.f32.mrb[65].mxu1 }
 0x833   : > { %v2564_v3 = vpop.f32.mrb[66].mxu1 }
 0x834   : > { %2781 = vrot.lane.b32.xlu1 %v2762_v43, %s3835_s21  ;;  %v3506_v37 = vpop.f32.mrb[67].mxu1 }
 0x862   : > { %v2609_v4 = vpop.f32.mrb[60].mxu0 }
 0x863   : > { %v2763_v5 = vmax.f32 %v2609_v4, 0.0  ;;  %v3511_v27 = vpop.f32.mrb[61].mxu0 }
 0x864   : > { %v2612_v28 = vpop.f32.mrb[62].mxu0 }
 0x865   : > { %2783 = vrot.lane.b32.xlu0 %v2763_v5, %s3835_s21  ;;  %v3512_v12 = vpop.f32.mrb[63].mxu0 }
 0x866   : > { %v2657_v51 = vpop.f32.mrb[68].mxu1 }
 0x867   : > { %v2764_v13 = vmax.f32 %v2657_v51, 0.0  ;;  %v3517_v0 = vpop.f32.mrb[69].mxu1 }
 0x868   : > { %v2660_v17 = vpop.f32.mrb[70].mxu1 }
 0x869   : > { %2785 = vrot.lane.b32.xlu1 %v2764_v13, %s3835_s21  ;;  %v3518_v18 = vpop.f32.mrb[71].mxu1 }
 0x86a   : > { %v2705_v19 = vpop.f32.mrb[64].mxu0 }
 0x86b   : > { %v2765_v21 = vmax.f32 %v2705_v19, 0.0  ;;  %v3523_v9 = vpop.f32.mrb[65].mxu0 }
 0x86c   : > { %v2708_v22 = vpop.f32.mrb[66].mxu0 }
 0x86d   : > { %2787 = vrot.lane.b32.xlu0 %v2765_v21, %s3835_s21  ;;  %v3524_v23 = vpop.f32.mrb[67].mxu0 }
 0x86e   : > { %v2753_v10 = vpop.f32.mrb[72].mxu1 }
 0x86f   : > { %v2766_v56 = vmax.f32 %v2753_v10, 0.0  ;;  %v3529_v26 = vpop.f32.mrb[73].mxu1 }
 0x870   : > { %v2756_v24 = vpop.f32.mrb[74].mxu1 }
 0x871   : > { %2789 = vrot.lane.b32.xlu1 %v2766_v56, %s3835_s21  ;;  %v3530_v29 = vpop.f32.mrb[75].mxu1  ;;  %s353_s21 = scalar_lea.vmem [#allocation4], %s3176_s27 }
 0x872   : > { %s3089_s0 = sshll.u32 %s353_s21, 4  ;;  %s4560_s0 = int_to_ptr.vmem [resolvable:$true] %s3089_s0 }
 0x873   : > { %s3770_s13 = scalar_lea.vmem %s4560_s0, 128 }
 0x874   : > { %p3771_p11 = scmp.ne.s32.totalorder %s4560_s0, %s3770_s13 }
 0x876   : > { %p3772_p12 = pnand %p3771_p11, %p3930_p5 }
 0x878   : > { %p3773_p13 = pneg %p3772_p12 }
 0x89a   : > { %v2776_v30 = vpop.permute.xlu0 %2775 }
 0x89b   : > { %v2799_v39 = vmul.f32 %v4371_v8, %v2776_v30 }
 0x89e   : > { %v2778_v31 = vpop.permute.xlu1 %2777 }
 0x89f   : > { %v2800_v33 = vmul.f32 %v4373_v6, %v2778_v31 }
 0x8a1   : > { %v2815_v45 = vcombine.low %v2799_v39, %v2800_v33 }
 0x8a2   : > { %v2780_v32 = vpop.permute.xlu0 %2779 }
 0x8a3   : > { %v2801_v40 = vmul.f32 %v4377_v20, %v2780_v32 }
 0x8a6   : > { %v2782_v38 = vpop.permute.xlu1 %2781 }
 0x8a7   : > { %v2802_v41 = vmul.f32 %v4379_v16, %v2782_v38 }
 0x8a9   : > { %v2816_v35 = vcombine.low %v2801_v40, %v2802_v41 }
 0x8ab   : > { %v2823_v34 = vpack.c.bf16 %v2816_v35, %v2815_v45 }
 0x8ad   : > { %2826 = vst.msk [vmem:[#allocation3] sm:$0xff] %vm2825_vm13, %v2823_v34 }
 0x8b4   : > { %v2828_v44 = vld [vmem:[#allocation3] sm:$0xff] }
 0x8b5   : > { %3539 = vmatprep.mubr.msk.bf16.mxu0 %vm2869_vm14, %v2828_v44 }
 0x8d7   : > { %v2784_v53 = vpop.permute.xlu0 %2783 }
 0x8d8   : > { %v2803_v20 = vmul.f32 %v4388_v55, %v2784_v53  ;;  %v3250_v55 = vld [vmem:[%s4611_s8] ss:$0 sm:$0xff] }
 0x8db   : > { %v2786_v54 = vpop.permute.xlu1 %2785 }
 0x8dc   : > { %v2804_v49 = vmul.f32 %v4390_v46, %v2786_v54 }
 0x8de   : > { %v2817_v58 = vcombine.low %v2803_v20, %v2804_v49 }
 0x8df   : > { %v2788_v6 = vpop.permute.xlu0 %2787 }
 0x8e0   : > { %v2805_v16 = vmul.f32 %v4394_v11, %v2788_v6 }
 0x8e3   : > { %v2790_v8 = vpop.permute.xlu1 %2789 }
 0x8e4   : > { %v2806_v48 = vmul.f32 %v4396_v52, %v2790_v8  ;;  %v3251_v52 = vld [vmem:[%s4611_s8 + $0x1] ss:$0 sm:$0xff] }
 0x8e6   : > { %v2818_v50 = vcombine.low %v2805_v16, %v2806_v48 }
 0x8e8   : > { %v2824_v36 = vpack.c.bf16 %v2818_v50, %v2817_v58 }
 0x8ea   : > { %2827 = vst.msk [vmem:[#allocation3 + $0x8] sm:$0xff] %vm2825_vm13, %v2824_v36 }
 0x8f1   : > { %v2829_v59 = vld [vmem:[#allocation3 + $0x8] sm:$0xff] }
 0x8f2   : > { %3540 = vmatmul.mubr.msk.bf16.vlgmr.msra.gmra.mrb[68].mxu0 %vm2869_vm14, %v2829_v59 }
 0x9c5   : > { %v3541_v46 = vpop.f32.mrb[68].mxu0 }
 0x9c6   : > { %v2919_v11 = vadd.f32 %v3541_v46, %v3243_v25  ;;  %v2910_v14 = vpop.f32.mrb[69].mxu0 }
 0x9c7   : > { %v2911_v1 = vadd.f32 %v3243_v25, %v2910_v14  ;;  %v3542_v2 = vpop.f32.mrb[70].mxu0 }
 0x9c8   : > { %v2932_v57 = vmul.f32 %v3250_v55, %v2919_v11  ;;  %v2922_v61 = vadd.f32 %v3542_v2, %v3243_v25  ;;  %v2913_v42 = vpop.f32.mrb[71].mxu0 }
 0x9c9   : > { %v2930_v62 = vmul.f32 %v3250_v55, %v2911_v1  ;;  %v2914_v43 = vadd.f32 %v3243_v25, %v2913_v42 }
 0x9ca   : > { %v2941_v63 = vadd.f32 %v3251_v52, %v2932_v57  ;;  %v2933_v3 = vmul.f32 %v3250_v55, %v2922_v61  ;;  %v3252_v61 = vld [vmem:[%s4611_s8 + $0x2] ss:$0 sm:$0xff] }
 0x9cb   : > { %v2939_v37 = vadd.f32 %v3251_v52, %v2930_v62  ;;  %v2931_v47 = vmul.f32 %v3250_v55, %v2914_v43 }
 0x9cc   : > { %v2945_v4 = vmax.f32 %v2941_v63, 0.0  ;;  %v2942_v5 = vadd.f32 %v3251_v52, %v2933_v3 }
 0x9cd   : > { %v2943_v27 = vmax.f32 %v2939_v37, 0.0  ;;  %v2940_v28 = vadd.f32 %v3251_v52, %v2931_v47 }
 0x9ce   : > { %v2953_v12 = vcombine.high %v2945_v4, %v2945_v4  ;;  %v2988_v51 = vsel %vm2959_vm15, %v2945_v4, 0.0  ;;  %v2946_v13 = vmax.f32 %v2942_v5, 0.0  ;;  %v3253_v5 = vld [vmem:[%s4611_s8 + $0x3] ss:$0 sm:$0xff] }
 0x9cf   : > { %v2989_v0 = vrot.slane %v2988_v51, 4  ;;  %v2951_v17 = vcombine.high %v2943_v27, %v2943_v27  ;;  %v2960_v18 = vsel %vm2959_vm15, %v2943_v27, 0.0  ;;  %v2944_v19 = vmax.f32 %v2940_v28, 0.0 }
 0x9d0   : > { %v2995_v60 = vsel %vm2959_vm15, %v2953_v12, 0.0  ;;  %v2961_v15 = vrot.slane %v2960_v18, 4  ;;  %v2954_v21 = vcombine.high %v2946_v13, %v2946_v13  ;;  %v3002_v9 = vsel %vm2959_vm15, %v2946_v13, 0.0 }
 0x9d1   : > { %v2990_v22 = vadd.f32 %v2989_v0, %v2988_v51  ;;  %v2996_v23 = vrot.slane %v2995_v60, 4  ;;  %v2967_v10 = vsel %vm2959_vm15, %v2951_v17, 0.0  ;;  %v3003_v7 = vrot.slane %v3002_v9, 4 }
 0x9d2   : > { %v2962_v56 = vadd.f32 %v2961_v15, %v2960_v18  ;;  %v2968_v26 = vrot.slane %v2967_v10, 4  ;;  %v3009_v24 = vsel %vm2959_vm15, %v2954_v21, 0.0  ;;  %v2952_v29 = vcombine.high %v2944_v19, %v2944_v19 }
 0x9d3   : > { %v2991_v30 = vrot.slane %v2990_v22, 2  ;;  %v2997_v31 = vadd.f32 %v2996_v23, %v2995_v60  ;;  %v3004_v32 = vadd.f32 %v3003_v7, %v3002_v9  ;;  %v3010_v33 = vrot.slane %v3009_v24, 4 }
 0x9d4   : > { %v2963_v38 = vrot.slane %v2962_v56, 2  ;;  %v2969_v39 = vadd.f32 %v2968_v26, %v2967_v10  ;;  %v2974_v40 = vsel %vm2959_vm15, %v2944_v19, 0.0  ;;  %v2981_v41 = vsel %vm2959_vm15, %v2952_v29, 0.0 }
 0x9d5   : > { %v2992_v45 = vadd.f32 %v2991_v30, %v2990_v22  ;;  %v2998_v35 = vrot.slane %v2997_v31, 2  ;;  %v3005_v34 = vrot.slane %v3004_v32, 2  ;;  %v3011_v44 = vadd.f32 %v3010_v33, %v3009_v24 }
 0x9d6   : > { %v2964_v53 = vadd.f32 %v2963_v38, %v2962_v56  ;;  %v2970_v54 = vrot.slane %v2969_v39, 2  ;;  %v2975_v6 = vrot.slane %v2974_v40, 4  ;;  %v2982_v49 = vrot.slane %v2981_v41, 4 }
 0x9d7   : > { %v2993_v8 = vrot.slane %v2992_v45, 1  ;;  %v2999_v20 = vadd.f32 %v2998_v35, %v2997_v31  ;;  %v3006_v16 = vadd.f32 %v3005_v34, %v3004_v32  ;;  %v3012_v48 = vrot.slane %v3011_v44, 2 }
 0x9d8   : > { %v2965_v58 = vrot.slane %v2964_v53, 1  ;;  %v2971_v50 = vadd.f32 %v2970_v54, %v2969_v39  ;;  %v2976_v36 = vadd.f32 %v2975_v6, %v2974_v40  ;;  %v2983_v59 = vadd.f32 %v2982_v49, %v2981_v41 }
 0x9d9   : > { %v3000_v25 = vrot.slane %v2999_v20, 1  ;;  %v3013_v46 = vadd.f32 %v3012_v48, %v3011_v44  ;;  %v3007_v11 = vrot.slane %v3006_v16, 1  ;;  %v2994_v57 = vadd.f32 %v2993_v8, %v2992_v45  ;;  %v3769_v44 = vld [vmem:[%s3951_s29] sm:$0xff]  ;;  %s3841_s29 = smov [#allocation4]  }
 0x9da   : > { %v2972_v55 = vrot.slane %v2971_v50, 1  ;;  %v2977_v14 = vrot.slane %v2976_v36, 2  ;;  %v2984_v52 = vrot.slane %v2983_v59, 2  ;;  %v2966_v1 = vadd.f32 %v2965_v58, %v2964_v53  ;;  %s3774_s22 = sshll.u32 %s3841_s29, 4  ;;  %s3775_s22 = int_to_ptr.vmem [resolvable:$false] %s3774_s22 }
 0x9db   : > { %v3014_v2 = vrot.slane %v3013_v46, 1  ;;  %v3001_v63 = vadd.f32 %v3000_v25, %v2999_v20  ;;  %v3008_v37 = vadd.f32 %v3007_v11, %v3006_v16  ;;  %v3025_v12 = vmul.f32 %v3252_v61, %v2994_v57  ;;  %s3776_s23 = scalar_lea.vmem %s3775_s22, 256  ;;  %p3777_p0 = scmp.lt.s32.totalorder %s4560_s0, %s3775_s22 }
 0x9dc   : > { %v2973_v42 = vadd.f32 %v2972_v55, %v2971_v50  ;;  %v2978_v62 = vadd.f32 %v2977_v14, %v2976_v36  ;;  %v2985_v43 = vadd.f32 %v2984_v52, %v2983_v59  ;;  %v3021_v27 = vmul.f32 %v3252_v61, %v2966_v1  ;;  %p3778_p1 = scmp.lt.s32.totalorder %s3776_s23, %s3770_s13 }
 0x9dd   : > { %v3015_v28 = vadd.f32 %v3014_v2, %v3013_v46  ;;  %v3026_v17 = vmul.f32 %v3252_v61, %v3001_v63  ;;  %v3027_v19 = vmul.f32 %v3252_v61, %v3008_v37  ;;  %v3038_v22 = vadd.f32 %v3253_v5, %v3025_v12 }
 0x9de   : > { %v3022_v3 = vmul.f32 %v3252_v61, %v2973_v42  ;;  %v2979_v47 = vrot.slane %v2978_v62, 1  ;;  %v2986_v4 = vrot.slane %v2985_v43, 1  ;;  %v3034_v21 = vadd.f32 %v3253_v5, %v3021_v27  ;;  %p3779_p2 = por %p3778_p1, %p3777_p0 }
 0x9df   : > { %v3028_v9 = vmul.f32 %v3252_v61, %v3015_v28  ;;  %v3039_v7 = vadd.f32 %v3253_v5, %v3026_v17  ;;  %v3040_v26 = vadd.f32 %v3253_v5, %v3027_v19  ;;  %v3059_v31 = vrot.slane %v3038_v22, 4 }
 0x9e0   : > { %v3035_v51 = vadd.f32 %v3253_v5, %v3022_v3  ;;  %v2980_v13 = vadd.f32 %v2979_v47, %v2978_v62  ;;  %v2987_v0 = vadd.f32 %v2986_v4, %v2985_v43  ;;  %p3780_p3 = pnand %p3779_p2, %p3773_p13 }
 0x9e1   : > { %v3041_v30 = vadd.f32 %v3253_v5, %v3028_v9  ;;  %v3062_v38 = vrot.slane %v3039_v7, 3  ;;  %v3065_v40 = vrot.slane %v3040_v26, 2 }
 0x9e2   : > { %v3050_v18 = vrot.slane %v3035_v51, 7  ;;  %v3023_v60 = vmul.f32 %v3252_v61, %v2980_v13  ;;  %v3024_v15 = vmul.f32 %v3252_v61, %v2987_v0 }
 0x9e3   : > { %v3068_v45 = vrot.slane %v3041_v30, 1 }
 0x9e4   : > { %v3036_v23 = vadd.f32 %v3253_v5, %v3023_v60  ;;  %v3037_v10 = vadd.f32 %v3253_v5, %v3024_v15  ;;  %v3052_v56 = vsel %vm3051_vm0, %v3050_v18, %v3034_v21 }
 0x9e6   : > { %v3053_v24 = vrot.slane %v3036_v23, 6  ;;  %v3056_v29 = vrot.slane %v3037_v10, 5 }
 0x9e8   : > { %v3055_v32 = vsel %vm3054_vm2, %v3053_v24, %v3052_v56 }
 0x9e9   : > { %v3058_v33 = vsel %vm3057_vm3, %v3056_v29, %v3055_v32 }
 0x9ea   : > { %v3061_v39 = vsel %vm3060_vm4, %v3059_v31, %v3058_v33 }
 0x9eb   : > { %v3064_v41 = vsel %vm3063_vm5, %v3062_v38, %v3061_v39 }
 0x9ec   : > { %v3067_v35 = vsel %vm3066_vm6, %v3065_v40, %v3064_v41 }
 0x9ed   : > { %v3070_v34 = vsel %vm3069_vm7, %v3068_v45, %v3067_v35 }
 0x9ee   : > { %v3072_v53 = vadd.f32 %v3769_v44, %v3070_v34 }
 0x9f0   : > { %v3073_v54 = vmax.f32 %v3072_v53, 0.0 }
 0x9f2   : > { %3074 = vst.msk [vmem:[%s353_s21] sm:$0xff] %vm415_vm1, %v3073_v54 }
 0x9f3   : > { %3783 = shalt.err (!%p3780_p3)
}
 0x9f4   : > { %s3784_s24 = scalar_lea.hbm %s4558_s16, 128  ;;  %s3788_s27 = scalar_lea.hbm %s4612_s9, 256 }
 0x9f5   : > { %p3785_p4 = scmp.ne.s32.totalorder %s4558_s16, %s3784_s24  ;;  %p3789_p9 = scmp.lt.u32.totalorder %s4558_s16, %s4612_s9 }
 0x9f6   : > { %p3790_p10 = scmp.lt.u32.totalorder %s3788_s27, %s3784_s24  ;;  %p3792_p12 = scmp.lt.u32.totalorder %s3784_s24, %s4558_s16 }
 0x9f7   : > { %p3786_p7 = pnand %p3785_p4, %p3930_p5 }
 0x9f8   : > { %p3791_p11 = por %p3790_p10, %p3789_p9 }
 0x9f9   : > { %p3787_p8 = pneg %p3786_p7 }
 0x9fa   : > { %p3793_p13 = por %p3792_p12, %p3791_p11 }
 0x9fc   : > { %p3794_p0 = pnand %p3793_p13, %p3787_p8 }
 0x9fe   : > { %3797 = shalt.err (!%p3794_p0)
}
 0x9ff   : > { %3544 = dma.vmem_to_hbm [thread:$0]  (%p3930_p5), %s4560_s0, 128, %s4558_s16, %s3076_s17  }
 0xa00 PF: > { %p3550_p1 = scmp.ge.s32.totalorder %s3832_s12, 2  ;;  %s3101_s2 = sand.u32 1, %s3820_s30  }
 0xa01   : > { %s3102_s14 = scalar_lea.sflag [#allocation5], %s3101_s2 }
 0xa02   : > { %p3547_p2 = pnand %p3550_p1, %p3934_p6 }
 0xa04   : > { %3815 = dma.done.wait (!%p3547_p2), %s3102_s14, 128  }
 0xa05   : > { %3817 = vsyncadd (!%p3547_p2), %s3102_s14, 4294967168  ;;  %p19_p3 = scmp.ge.s32.totalorder %s3917_s15, 4   ;;  %s4619_s30 = smov %s3824_s10 }
 0xa06   : > { %s4620_s10 = smov %s3828_s11  ;;  %s4621_s11 = smov %s3928_s18 }
 0xa07   : > { %s4622_s12 = smov %s3917_s15  ;;  %21 = sbr.rel (!%p19_p3) target bundleno = 6 (0x6), region = 97 }
 0xa0e   :  { %3107 = vsyncpa [#allocation5], 1 }
 0xa0f   :  { %3109 = vsyncpa [#allocation5 + $0x1], 1 }

</bundles_post_ra>
